<compile_context>
chip_gen: v5e
topology: v5e:2x2
jax: 0.10.0
libtpu: 0.0.40
codegen_flags: <defaults>
</compile_context>

<pallas_src>
import functools
import math

import jax
import jax.numpy as jnp
from jax.experimental import pallas as pl
from jax.experimental.pallas import tpu as pltpu


NEG_INF = -1e9  # large negative instead of -inf keeps softmax NaN-free


# ----------------------------------------------------------------------------- helpers

def _pick(dim, candidates):
    """Pick the largest candidate tile that evenly divides dim, else full dim."""
    for c in candidates:
        if c <= dim and dim % c == 0:
            return c
    return dim


# ----------------------------------------------------------------------------- kernels

def _linear_kernel(x_ref, w_ref, b_ref, o_ref, acc_ref):
    # x: (tm, tk), w: (tk, tn), b: (1, tn); K is the last grid axis.
    @pl.when(pl.program_id(2) == 0)
    def _():
        acc_ref[...] = jnp.zeros_like(acc_ref)

    acc_ref[...] += jnp.dot(x_ref[...], w_ref[...],
                            preferred_element_type=jnp.float32)

    @pl.when(pl.program_id(2) == pl.num_programs(2) - 1)
    def _():
        o_ref[...] = (acc_ref[...] + b_ref[...]).astype(o_ref.dtype)


def _linear_ln_kernel(x_ref, w_ref, b_ref, r_ref, g_ref, be_ref, o_ref, acc_ref,
                      *, eps):
    # matmul + bias + residual add + LayerNorm fused epilogue (tn == full N).
    @pl.when(pl.program_id(1) == 0)
    def _():
        acc_ref[...] = jnp.zeros_like(acc_ref)

    acc_ref[...] += jnp.dot(x_ref[...], w_ref[...],
                            preferred_element_type=jnp.float32)

    @pl.when(pl.program_id(1) == pl.num_programs(1) - 1)
    def _():
        y = acc_ref[...] + b_ref[...] + r_ref[...]
        mu = jnp.mean(y, axis=-1, keepdims=True)
        var = jnp.mean(jnp.square(y - mu), axis=-1, keepdims=True)
        yn = (y - mu) * jax.lax.rsqrt(var + eps)
        o_ref[...] = (yn * g_ref[...] + be_ref[...]).astype(o_ref.dtype)


def _ffn_ln_kernel(x_ref, w1_ref, b1_ref, w2_ref, b2_ref, r_ref, g_ref, be_ref,
                   o_ref, *, eps):
    # relu(x@W1 + b1) @ W2 + b2 + residual -> LayerNorm.  Hidden tile stays in VMEM.
    h = jnp.dot(x_ref[...], w1_ref[...],
                preferred_element_type=jnp.float32) + b1_ref[...]
    h = jnp.maximum(h, 0.0)
    y = jnp.dot(h.astype(w2_ref.dtype), w2_ref[...],
                preferred_element_type=jnp.float32)
    y = y + b2_ref[...] + r_ref[...]
    mu = jnp.mean(y, axis=-1, keepdims=True)
    var = jnp.mean(jnp.square(y - mu), axis=-1, keepdims=True)
    yn = (y - mu) * jax.lax.rsqrt(var + eps)
    o_ref[...] = (yn * g_ref[...] + be_ref[...]).astype(o_ref.dtype)


def _ln_kernel(x_ref, g_ref, b_ref, o_ref, *, eps):
    y = x_ref[...]
    mu = jnp.mean(y, axis=-1, keepdims=True)
    var = jnp.mean(jnp.square(y - mu), axis=-1, keepdims=True)
    o_ref[...] = ((y - mu) * jax.lax.rsqrt(var + eps) * g_ref[...]
                  + b_ref[...]).astype(o_ref.dtype)


def _attn_kernel(qk_ref, v_ref, am_ref, kpm_ref, o_ref, *, nhead, scale):
    # One batch per grid step, all heads; lane-dense (L, E) output tile.
    # qk: (1, L, 2E) fused [Q|K] projections, v: (1, S, E),
    # am: (L, S) additive attn mask, kpm: (1, 1, S) additive key-padding bias.
    L = qk_ref.shape[1]
    E = qk_ref.shape[2] // 2
    hd = E // nhead

    qk = qk_ref[0]                         # (L, 2E) in VMEM
    v = v_ref[0]                           # (S, E)
    base_mask = am_ref[...] + kpm_ref[0]   # (L, S), built in-kernel (no HBM mask)

    heads = []
    for h in range(nhead):                 # unrolled; all heads share this grid step
        qh = qk[:, h * hd:(h + 1) * hd]
        kh = qk[:, E + h * hd:E + (h + 1) * hd]
        vh = v[:, h * hd:(h + 1) * hd]
        # contract last dims directly -> no explicit kh.T / XLU transpose
        s = jax.lax.dot_general(qh, kh, (((1,), (1,)), ((), ())),
                                preferred_element_type=jnp.float32)
        s = s * scale + base_mask
        s = s - jnp.max(s, axis=-1, keepdims=True)
        p = jnp.exp(s)
        p = p * pl.reciprocal(jnp.sum(p, axis=-1, keepdims=True), approx=False)
        heads.append(jnp.dot(p.astype(vh.dtype), vh,
                             preferred_element_type=jnp.float32))
    o = jnp.concatenate(heads, axis=-1)    # (L, E), lane-dense
    o_ref[0] = o.astype(o_ref.dtype)


# ----------------------------------------------------------------------------- wrappers

def linear_pallas(x2d, w_t, b):
    """x2d: (M, K), w_t: (K, N), b: (N,) -> (M, N), tiled + pipelined."""
    M, K = x2d.shape
    N = w_t.shape[1]
    tm = _pick(M, (512, 256, 128, 64, 32, 16, 8))
    tn = _pick(N, (512, 256, 128))
    tk = _pick(K, (512, 256, 128))
    return pl.pallas_call(
        _linear_kernel,
        out_shape=jax.ShapeDtypeStruct((M, N), x2d.dtype),
        grid=(M // tm, N // tn, K // tk),
        in_specs=[
            pl.BlockSpec((tm, tk), lambda i, j, k: (i, k)),
            pl.BlockSpec((tk, tn), lambda i, j, k: (k, j)),
            pl.BlockSpec((1, tn), lambda i, j, k: (0, j)),
        ],
        out_specs=pl.BlockSpec((tm, tn), lambda i, j, k: (i, j)),
        scratch_shapes=[pltpu.VMEM((tm, tn), jnp.float32)],
        compiler_params=pltpu.CompilerParams(
            dimension_semantics=("parallel", "parallel", "arbitrary")),
    )(x2d, w_t, b.reshape(1, N))


def linear_ln_pallas(x2d, w_t, b, residual, gamma, beta, eps=1e-5):
    """LayerNorm(residual + x2d @ w_t + b), fused. N kept whole per tile."""
    M, K = x2d.shape
    N = w_t.shape[1]
    tm = _pick(M, (512, 256, 128, 64, 32, 16, 8))
    tk = _pick(K, (512, 256, 128))
    kern = functools.partial(_linear_ln_kernel, eps=eps)
    return pl.pallas_call(
        kern,
        out_shape=jax.ShapeDtypeStruct((M, N), x2d.dtype),
        grid=(M // tm, K // tk),
        in_specs=[
            pl.BlockSpec((tm, tk), lambda i, k: (i, k)),
            pl.BlockSpec((tk, N), lambda i, k: (k, 0)),
            pl.BlockSpec((1, N), lambda i, k: (0, 0)),
            pl.BlockSpec((tm, N), lambda i, k: (i, 0)),
            pl.BlockSpec((1, N), lambda i, k: (0, 0)),
            pl.BlockSpec((1, N), lambda i, k: (0, 0)),
        ],
        out_specs=pl.BlockSpec((tm, N), lambda i, k: (i, 0)),
        scratch_shapes=[pltpu.VMEM((tm, N), jnp.float32)],
        compiler_params=pltpu.CompilerParams(
            dimension_semantics=("parallel", "arbitrary")),
    )(x2d, w_t, b.reshape(1, N), residual, gamma.reshape(1, N),
      beta.reshape(1, N))


def ffn_ln_pallas(x2d, w1_t, b1, w2_t, b2, residual, gamma, beta, eps=1e-5):
    """LayerNorm(residual + relu(x@W1+b1)@W2+b2); hidden never leaves VMEM."""
    M, E = x2d.shape
    F = w1_t.shape[1]
    tm = _pick(M, (256, 128, 64, 32, 16, 8))
    kern = functools.partial(_ffn_ln_kernel, eps=eps)
    return pl.pallas_call(
        kern,
        out_shape=jax.ShapeDtypeStruct((M, E), x2d.dtype),
        grid=(M // tm,),
        in_specs=[
            pl.BlockSpec((tm, E), lambda i: (i, 0)),
            pl.BlockSpec((E, F), lambda i: (0, 0)),
            pl.BlockSpec((1, F), lambda i: (0, 0)),
            pl.BlockSpec((F, E), lambda i: (0, 0)),
            pl.BlockSpec((1, E), lambda i: (0, 0)),
            pl.BlockSpec((tm, E), lambda i: (i, 0)),
            pl.BlockSpec((1, E), lambda i: (0, 0)),
            pl.BlockSpec((1, E), lambda i: (0, 0)),
        ],
        out_specs=pl.BlockSpec((tm, E), lambda i: (i, 0)),
        compiler_params=pltpu.CompilerParams(dimension_semantics=("parallel",)),
    )(x2d, w1_t, b1.reshape(1, F), w2_t, b2.reshape(1, E), residual,
      gamma.reshape(1, E), beta.reshape(1, E))


def layernorm_pallas(x2d, gamma, beta, eps=1e-5):
    M, E = x2d.shape
    tm = _pick(M, (512, 256, 128, 64, 32, 16, 8))
    kern = functools.partial(_ln_kernel, eps=eps)
    return pl.pallas_call(
        kern,
        out_shape=jax.ShapeDtypeStruct((M, E), x2d.dtype),
        grid=(M // tm,),
        in_specs=[
            pl.BlockSpec((tm, E), lambda i: (i, 0)),
            pl.BlockSpec((1, E), lambda i: (0, 0)),
            pl.BlockSpec((1, E), lambda i: (0, 0)),
        ],
        out_specs=pl.BlockSpec((tm, E), lambda i: (i, 0)),
        compiler_params=pltpu.CompilerParams(dimension_semantics=("parallel",)),
    )(x2d, gamma.reshape(1, E), beta.reshape(1, E))


def attention_pallas(qk, v, attn_mask, kpm, nhead):
    """qk: (B, L, 2E) fused [Q|K], v: (B, S, E), attn_mask: (L, S) additive,
    kpm: (B, 1, S) additive key-padding bias. Returns (B, L, E)."""
    B, L, E2 = qk.shape
    E = E2 // 2
    S = v.shape[1]
    scale = 1.0 / math.sqrt(E // nhead)
    kern = functools.partial(_attn_kernel, nhead=nhead, scale=scale)
    return pl.pallas_call(
        kern,
        out_shape=jax.ShapeDtypeStruct((B, L, E), v.dtype),
        grid=(B,),
        in_specs=[
            pl.BlockSpec((1, L, 2 * E), lambda b: (b, 0, 0)),
            pl.BlockSpec((1, S, E), lambda b: (b, 0, 0)),
            pl.BlockSpec((L, S), lambda b: (0, 0)),      # broadcast, never replicated in HBM
            pl.BlockSpec((1, 1, S), lambda b: (b, 0, 0)),
        ],
        out_specs=pl.BlockSpec((1, L, E), lambda b: (b, 0, 0)),
        compiler_params=pltpu.CompilerParams(dimension_semantics=("parallel",)),
    )(qk, v, attn_mask, kpm)


# ----------------------------------------------------------------------------- encoder

def _prepare_layer(p, E):
    """Convert torch-layout layer params to fused / transposed kernel layout."""
    wq, wk, wv = p["in_w"][:E], p["in_w"][E:2 * E], p["in_w"][2 * E:]
    bq, bk, bv = p["in_b"][:E], p["in_b"][E:2 * E], p["in_b"][2 * E:]
    return {
        "wqk_t": jnp.concatenate([wq.T, wk.T], axis=1),   # (E, 2E)
        "bqk": jnp.concatenate([bq, bk]),                 # (2E,)
        "wv_t": wv.T, "bv": bv,
        "wo_t": p["out_w"].T, "bo": p["out_b"],
        "w1_t": p["w1"].T, "b1": p["b1"],
        "w2_t": p["w2"].T, "b2": p["b2"],
        "ln1_g": p["ln1_g"], "ln1_b": p["ln1_b"],
        "ln2_g": p["ln2_g"], "ln2_b": p["ln2_b"],
    }


def _encoder_layer(kp, x, pos_add, attn_mask, kpm, nhead):
    # x, pos_add: (B, L, E) batch-major.  forward_post, dropout = identity.
    B, L, E = x.shape
    M = B * L
    x2d = x.reshape(M, E)
    q_in = (x + pos_add).reshape(M, E)

    # fused Q|K projection on (src + pos); V projection on src
    qk = linear_pallas(q_in, kp["wqk_t"], kp["bqk"]).reshape(B, L, 2 * E)
    v = linear_pallas(x2d, kp["wv_t"], kp["bv"]).reshape(B, L, E)

    attn = attention_pallas(qk, v, attn_mask, kpm, nhead)        # (B, L, E)

    # out-projection + residual + LayerNorm1 fused
    x2d = linear_ln_pallas(attn.reshape(M, E), kp["wo_t"], kp["bo"],
                           x2d, kp["ln1_g"], kp["ln1_b"])
    # FFN (W1 -> ReLU -> W2) + residual + LayerNorm2 fused
    x2d = ffn_ln_pallas(x2d, kp["w1_t"], kp["b1"], kp["w2_t"], kp["b2"],
                        x2d, kp["ln2_g"], kp["ln2_b"])
    return x2d.reshape(B, L, E)


def transformer_encoder(layer_params, norm_params, src, mask,
                        src_key_padding_mask, pos, nhead):
    """src/pos: (S, B, E) seq-major (PyTorch convention)."""
    S, B, E = src.shape
    x = jnp.transpose(src, (1, 0, 2))                      # (B, S, E) internally
    pos_add = (jnp.zeros_like(x) if pos is None
               else jnp.transpose(pos, (1, 0, 2)))
    attn_mask = (jnp.zeros((S, S), jnp.float32) if mask is None
                 else mask.astype(jnp.float32))
    if src_key_padding_mask is None:
        kpm = jnp.zeros((B, 1, S), jnp.float32)
    else:
        kpm = jnp.where(src_key_padding_mask, NEG_INF,
                        0.0).astype(jnp.float32)[:, None, :]

    for p in layer_params:
        kp = _prepare_layer(p, E)
        x = _encoder_layer(kp, x, pos_add, attn_mask, kpm, nhead)

    out2d = x.reshape(B * S, E)
    if norm_params is not None:
        out2d = layernorm_pallas(out2d, norm_params["g"], norm_params["b"])
    return jnp.transpose(out2d.reshape(B, S, E), (1, 0, 2))


# ----------------------------------------------------------------------------- pure-JAX reference

def _ref_ln(x, g, b, eps=1e-5):
    mu = x.mean(-1, keepdims=True)
    var = ((x - mu) ** 2).mean(-1, keepdims=True)
    return (x - mu) * jax.lax.rsqrt(var + eps) * g + b


def _ref_mha(x_qk, x_v, in_w, in_b, out_w, out_b, nhead, attn_mask, kpm):
    L, B, E = x_qk.shape
    H, hd = nhead, E // nhead
    scale = 1.0 / math.sqrt(hd)
    wq, wk, wv = in_w[:E], in_w[E:2 * E], in_w[2 * E:]
    bq, bk, bv = in_b[:E], in_b[E:2 * E], in_b[2 * E:]
    q = x_qk @ wq.T + bq
    k = x_qk @ wk.T + bk
    v = x_v @ wv.T + bv
    q = q.reshape(L, B, H, hd).transpose(1, 2, 0, 3)
    k = k.reshape(L, B, H, hd).transpose(1, 2, 0, 3)
    v = v.reshape(L, B, H, hd).transpose(1, 2, 0, 3)
    s = jnp.einsum("bhld,bhsd->bhls", q, k) * scale
    if attn_mask is not None:
        s = s + attn_mask[None, None]
    if kpm is not None:
        s = s + jnp.where(kpm, NEG_INF, 0.0)[:, None, None, :]
    p = jax.nn.softmax(s, axis=-1)
    o = jnp.einsum("bhls,bhsd->bhld", p, v)
    o = o.transpose(2, 0, 1, 3).reshape(L, B, E)
    return o @ out_w.T + out_b


def _ref_encoder_layer(p, src, mask, kpm, pos, nhead):
    q = src if pos is None else src + pos
    s2 = _ref_mha(q, src, p["in_w"], p["in_b"], p["out_w"], p["out_b"],
                  nhead, mask, kpm)
    src = _ref_ln(src + s2, p["ln1_g"], p["ln1_b"])
    s2 = jnp.maximum(src @ p["w1"].T + p["b1"], 0.0) @ p["w2"].T + p["b2"]
    src = _ref_ln(src + s2, p["ln2_g"], p["ln2_b"])
    return src


def _ref_encoder(layers, norm, src, mask, kpm, pos, nhead):
    out = src
    for p in layers:
        out = _ref_encoder_layer(p, out, mask, kpm, pos, nhead)
    if norm is not None:
        out = _ref_ln(out, norm["g"], norm["b"])
    return out


# ----------------------------------------------------------------------------- main

if __name__ == "__main__":
    d_model, nhead, dim_ff = 32, 4, 64
    S, B, num_layers = 16, 2, 2

    key = jax.random.PRNGKey(0)
    keys = jax.random.split(key, num_layers * 8 + 2)

    def init(k, shape, scale=0.1):
        return (scale * jax.random.normal(k, shape)).astype(jnp.float32)

    layers = []
    ki = 0
    for _ in range(num_layers):
        layers.append({
            "in_w": init(keys[ki + 0], (3 * d_model, d_model)),
            "in_b": init(keys[ki + 1], (3 * d_model,)),
            "out_w": init(keys[ki + 2], (d_model, d_model)),
            "out_b": init(keys[ki + 3], (d_model,)),
            "w1": init(keys[ki + 4], (dim_ff, d_model)),
            "b1": init(keys[ki + 5], (dim_ff,)),
            "w2": init(keys[ki + 6], (d_model, dim_ff)),
            "b2": init(keys[ki + 7], (d_model,)),
            "ln1_g": jnp.ones((d_model,), jnp.float32),
            "ln1_b": jnp.zeros((d_model,), jnp.float32),
            "ln2_g": jnp.ones((d_model,), jnp.float32),
            "ln2_b": jnp.zeros((d_model,), jnp.float32),
        })
        ki += 8
    norm = {"g": jnp.ones((d_model,), jnp.float32),
            "b": jnp.zeros((d_model,), jnp.float32)}

    src = init(keys[ki], (S, B, d_model), 1.0)
    pos = init(keys[ki + 1], (S, B, d_model), 1.0)
    # mask=None (DETR encoder usage); pad the last source position of batch 1
    src_key_padding_mask = jnp.zeros((B, S), dtype=bool).at[1, S - 1].set(True)

    fwd = jax.jit(lambda lp, nrm, s, kpm, p: transformer_encoder(
        lp, nrm, s, None, kpm, p, nhead))
    out = fwd(layers, norm, src, src_key_padding_mask, pos)
    out = jax.block_until_ready(out)

    ref = _ref_encoder(layers, norm, src, None, src_key_padding_mask, pos, nhead)

    assert out.shape == (S, B, d_model)
    assert bool(jnp.all(jnp.isfinite(out)))
    assert bool(jnp.allclose(out, ref, rtol=2e-3, atol=5e-4)), "mismatch vs reference"

    print("KERNEL_OK")
</pallas_src>

<mosaic_0001>
module attributes {stable_mosaic.version = 11 : i64} {
  func.func @_linear_kernel(%arg0: i32, %arg1: i32, %arg2: i32, %arg3: memref<32x32xf32, #tpu.memory_space<vmem>>, %arg4: memref<32x64xf32, #tpu.memory_space<vmem>>, %arg5: memref<1x64xf32, #tpu.memory_space<vmem>>, %arg6: memref<32x64xf32, #tpu.memory_space<vmem>>, %arg7: memref<32x64xf32, #tpu.memory_space<vmem>>) attributes {dimension_semantics = [#tpu.dimension_semantics<parallel>, #tpu.dimension_semantics<parallel>, #tpu.dimension_semantics<arbitrary>], iteration_bounds = array<i64: 1, 1, 1>, scalar_prefetch = 0 : i64, scratch_operands = 1 : i64, tpu.core_type = #tpu.core_type<tc>, window_params = [{transform_indices = @transform_0, window_bounds = array<i64: 32, 32>}, {transform_indices = @transform_1, window_bounds = array<i64: 32, 64>}, {transform_indices = @transform_2, window_bounds = array<i64: 1, 64>}, {transform_indices = @transform_3, window_bounds = array<i64: 32, 64>}]} {
    %c0_i32 = arith.constant 0 : i32
    %0 = arith.cmpi eq, %arg2, %c0_i32 : i32
    %1 = arith.extui %0 : i1 to i32
    %c0_i32_0 = arith.constant 0 : i32
    %2 = arith.cmpi ne, %1, %c0_i32_0 : i32
    scf.if %2 {
      %cst_10 = arith.constant 0.000000e+00 : f32
      %12 = vector.broadcast %cst_10 : f32 to vector<32x64xf32>
      %c0_11 = arith.constant 0 : index
      %c0_12 = arith.constant 0 : index
      %13 = vector.load %arg7[%c0_11, %c0_12] : memref<32x64xf32, #tpu.memory_space<vmem>>, vector<32x64xf32>
      tpu.vector_store %arg7[%c0_11, %c0_12], %12 {strides = array<i32>} : memref<32x64xf32, #tpu.memory_space<vmem>>, vector<32x64xf32>,
    } else {
    }
    %c0 = arith.constant 0 : index
    %c0_1 = arith.constant 0 : index
    %3 = vector.load %arg7[%c0, %c0_1] : memref<32x64xf32, #tpu.memory_space<vmem>>, vector<32x64xf32>
    %c0_2 = arith.constant 0 : index
    %c0_3 = arith.constant 0 : index
    %4 = vector.load %arg3[%c0_2, %c0_3] : memref<32x32xf32, #tpu.memory_space<vmem>>, vector<32x32xf32>
    %c0_4 = arith.constant 0 : index
    %c0_5 = arith.constant 0 : index
    %5 = vector.load %arg4[%c0_4, %c0_5] : memref<32x64xf32, #tpu.memory_space<vmem>>, vector<32x64xf32>
    %cst = arith.constant dense<0.000000e+00> : vector<32x64xf32>
    %6 = tpu.matmul %4, %5, %cst {dimension_numbers = #tpu.dot_dimension_numbers<[1], [0], [0], [1], [0, 0, 1, 1], [], []>} : vector<32x32xf32>, vector<32x64xf32>, vector<32x64xf32> -> vector<32x64xf32>
    %7 = arith.addf %3, %6 : vector<32x64xf32>
    %c0_6 = arith.constant 0 : index
    %c0_7 = arith.constant 0 : index
    %8 = vector.load %arg7[%c0_6, %c0_7] : memref<32x64xf32, #tpu.memory_space<vmem>>, vector<32x64xf32>
    tpu.vector_store %arg7[%c0_6, %c0_7], %7 {strides = array<i32>} : memref<32x64xf32, #tpu.memory_space<vmem>>, vector<32x64xf32>,
    %c0_i32_8 = arith.constant 0 : i32
    %9 = arith.cmpi eq, %arg2, %c0_i32_8 : i32
    %10 = arith.extui %9 : i1 to i32
    %c0_i32_9 = arith.constant 0 : i32
    %11 = arith.cmpi ne, %10, %c0_i32_9 : i32
    scf.if %11 {
      %c0_10 = arith.constant 0 : index
      %c0_11 = arith.constant 0 : index
      %12 = vector.load %arg7[%c0_10, %c0_11] : memref<32x64xf32, #tpu.memory_space<vmem>>, vector<32x64xf32>
      %c0_12 = arith.constant 0 : index
      %c0_13 = arith.constant 0 : index
      %13 = vector.load %arg5[%c0_12, %c0_13] : memref<1x64xf32, #tpu.memory_space<vmem>>, vector<1x64xf32>
      %14 = vector.broadcast %13 : vector<1x64xf32> to vector<32x64xf32>
      %15 = arith.addf %12, %14 : vector<32x64xf32>
      %c0_14 = arith.constant 0 : index
      %c0_15 = arith.constant 0 : index
      %16 = vector.load %arg6[%c0_14, %c0_15] : memref<32x64xf32, #tpu.memory_space<vmem>>, vector<32x64xf32>
      tpu.vector_store %arg6[%c0_14, %c0_15], %15 {strides = array<i32>} : memref<32x64xf32, #tpu.memory_space<vmem>>, vector<32x64xf32>,
    } else {
    }
    return
  }
  func.func @transform_0(%arg0: i32, %arg1: i32, %arg2: i32) -> (i32, i32) {
    %c0_i32 = arith.constant 0 : i32
    return %arg0, %arg2 : i32, i32
  }
  func.func @transform_1(%arg0: i32, %arg1: i32, %arg2: i32) -> (i32, i32) {
    %c0_i32 = arith.constant 0 : i32
    return %arg2, %arg1 : i32, i32
  }
  func.func @transform_2(%arg0: i32, %arg1: i32, %arg2: i32) -> (i32, i32) {
    %c0_i32 = arith.constant 0 : i32
    %c0_i32_0 = arith.constant 0 : i32
    return %c0_i32, %arg1 : i32, i32
  }
  func.func @transform_3(%arg0: i32, %arg1: i32, %arg2: i32) -> (i32, i32) {
    %c0_i32 = arith.constant 0 : i32
    return %arg0, %arg1 : i32, i32
  }
}

module attributes {stable_mosaic.version = 11 : i64} {
  func.func @_linear_kernel(%arg0: i32, %arg1: i32, %arg2: i32, %arg3: memref<32x32xf32, #tpu.memory_space<vmem>>, %arg4: memref<32x32xf32, #tpu.memory_space<vmem>>, %arg5: memref<1x32xf32, #tpu.memory_space<vmem>>, %arg6: memref<32x32xf32, #tpu.memory_space<vmem>>, %arg7: memref<32x32xf32, #tpu.memory_space<vmem>>) attributes {dimension_semantics = [#tpu.dimension_semantics<parallel>, #tpu.dimension_semantics<parallel>, #tpu.dimension_semantics<arbitrary>], iteration_bounds = array<i64: 1, 1, 1>, scalar_prefetch = 0 : i64, scratch_operands = 1 : i64, tpu.core_type = #tpu.core_type<tc>, window_params = [{transform_indices = @transform_0, window_bounds = array<i64: 32, 32>}, {transform_indices = @transform_1, window_bounds = array<i64: 32, 32>}, {transform_indices = @transform_2, window_bounds = array<i64: 1, 32>}, {transform_indices = @transform_3, window_bounds = array<i64: 32, 32>}]} {
    %c0_i32 = arith.constant 0 : i32
    %0 = arith.cmpi eq, %arg2, %c0_i32 : i32
    %1 = arith.extui %0 : i1 to i32
    %c0_i32_0 = arith.constant 0 : i32
    %2 = arith.cmpi ne, %1, %c0_i32_0 : i32
    scf.if %2 {
      %cst_10 = arith.constant 0.000000e+00 : f32
      %12 = vector.broadcast %cst_10 : f32 to vector<32x32xf32>
      %c0_11 = arith.constant 0 : index
      %c0_12 = arith.constant 0 : index
      %13 = vector.load %arg7[%c0_11, %c0_12] : memref<32x32xf32, #tpu.memory_space<vmem>>, vector<32x32xf32>
      tpu.vector_store %arg7[%c0_11, %c0_12], %12 {strides = array<i32>} : memref<32x32xf32, #tpu.memory_space<vmem>>, vector<32x32xf32>,
    } else {
    }
    %c0 = arith.constant 0 : index
    %c0_1 = arith.constant 0 : index
    %3 = vector.load %arg7[%c0, %c0_1] : memref<32x32xf32, #tpu.memory_space<vmem>>, vector<32x32xf32>
    %c0_2 = arith.constant 0 : index
    %c0_3 = arith.constant 0 : index
    %4 = vector.load %arg3[%c0_2, %c0_3] : memref<32x32xf32, #tpu.memory_space<vmem>>, vector<32x32xf32>
    %c0_4 = arith.constant 0 : index
    %c0_5 = arith.constant 0 : index
    %5 = vector.load %arg4[%c0_4, %c0_5] : memref<32x32xf32, #tpu.memory_space<vmem>>, vector<32x32xf32>
    %cst = arith.constant dense<0.000000e+00> : vector<32x32xf32>
    %6 = tpu.matmul %4, %5, %cst {dimension_numbers = #tpu.dot_dimension_numbers<[1], [0], [0], [1], [0, 0, 1, 1], [], []>} : vector<32x32xf32>, vector<32x32xf32>, vector<32x32xf32> -> vector<32x32xf32>
    %7 = arith.addf %3, %6 : vector<32x32xf32>
    %c0_6 = arith.constant 0 : index
    %c0_7 = arith.constant 0 : index
    %8 = vector.load %arg7[%c0_6, %c0_7] : memref<32x32xf32, #tpu.memory_space<vmem>>, vector<32x32xf32>
    tpu.vector_store %arg7[%c0_6, %c0_7], %7 {strides = array<i32>} : memref<32x32xf32, #tpu.memory_space<vmem>>, vector<32x32xf32>,
    %c0_i32_8 = arith.constant 0 : i32
    %9 = arith.cmpi eq, %arg2, %c0_i32_8 : i32
    %10 = arith.extui %9 : i1 to i32
    %c0_i32_9 = arith.constant 0 : i32
    %11 = arith.cmpi ne, %10, %c0_i32_9 : i32
    scf.if %11 {
      %c0_10 = arith.constant 0 : index
      %c0_11 = arith.constant 0 : index
      %12 = vector.load %arg7[%c0_10, %c0_11] : memref<32x32xf32, #tpu.memory_space<vmem>>, vector<32x32xf32>
      %c0_12 = arith.constant 0 : index
      %c0_13 = arith.constant 0 : index
      %13 = vector.load %arg5[%c0_12, %c0_13] : memref<1x32xf32, #tpu.memory_space<vmem>>, vector<1x32xf32>
      %14 = vector.broadcast %13 : vector<1x32xf32> to vector<32x32xf32>
      %15 = arith.addf %12, %14 : vector<32x32xf32>
      %c0_14 = arith.constant 0 : index
      %c0_15 = arith.constant 0 : index
      %16 = vector.load %arg6[%c0_14, %c0_15] : memref<32x32xf32, #tpu.memory_space<vmem>>, vector<32x32xf32>
      tpu.vector_store %arg6[%c0_14, %c0_15], %15 {strides = array<i32>} : memref<32x32xf32, #tpu.memory_space<vmem>>, vector<32x32xf32>,
    } else {
    }
    return
  }
  func.func @transform_0(%arg0: i32, %arg1: i32, %arg2: i32) -> (i32, i32) {
    %c0_i32 = arith.constant 0 : i32
    return %arg0, %arg2 : i32, i32
  }
  func.func @transform_1(%arg0: i32, %arg1: i32, %arg2: i32) -> (i32, i32) {
    %c0_i32 = arith.constant 0 : i32
    return %arg2, %arg1 : i32, i32
  }
  func.func @transform_2(%arg0: i32, %arg1: i32, %arg2: i32) -> (i32, i32) {
    %c0_i32 = arith.constant 0 : i32
    %c0_i32_0 = arith.constant 0 : i32
    return %c0_i32, %arg1 : i32, i32
  }
  func.func @transform_3(%arg0: i32, %arg1: i32, %arg2: i32) -> (i32, i32) {
    %c0_i32 = arith.constant 0 : i32
    return %arg0, %arg1 : i32, i32
  }
}

module attributes {stable_mosaic.version = 11 : i64} {
  func.func @_attn_kernel(%arg0: i32, %arg1: memref<1x16x64xf32, #tpu.memory_space<vmem>>, %arg2: memref<1x16x32xf32, #tpu.memory_space<vmem>>, %arg3: memref<16x16xf32, #tpu.memory_space<vmem>>, %arg4: memref<1x1x16xf32, #tpu.memory_space<vmem>>, %arg5: memref<1x16x32xf32, #tpu.memory_space<vmem>>) attributes {dimension_semantics = [#tpu.dimension_semantics<parallel>], iteration_bounds = array<i64: 2>, scalar_prefetch = 0 : i64, scratch_operands = 0 : i64, tpu.core_type = #tpu.core_type<tc>, window_params = [{transform_indices = @transform_0, window_bounds = array<i64: 1, 16, 64>}, {transform_indices = @transform_1, window_bounds = array<i64: 1, 16, 32>}, {pipeline_mode = #tpu.pipeline_mode<synchronous>, transform_indices = @transform_2, window_bounds = array<i64: 16, 16>}, {transform_indices = @transform_3, window_bounds = array<i64: 1, 1, 16>}, {transform_indices = @transform_4, window_bounds = array<i64: 1, 16, 32>}]} {
    %c0 = arith.constant 0 : index
    %c0_0 = arith.constant 0 : index
    %c0_1 = arith.constant 0 : index
    %0 = vector.load %arg1[%c0, %c0_0, %c0_1] : memref<1x16x64xf32, #tpu.memory_space<vmem>>, vector<1x16x64xf32>
    %1 = vector.shape_cast %0 : vector<1x16x64xf32> to vector<16x64xf32>
    %c0_2 = arith.constant 0 : index
    %c0_3 = arith.constant 0 : index
    %c0_4 = arith.constant 0 : index
    %2 = vector.load %arg2[%c0_2, %c0_3, %c0_4] : memref<1x16x32xf32, #tpu.memory_space<vmem>>, vector<1x16x32xf32>
    %3 = vector.shape_cast %2 : vector<1x16x32xf32> to vector<16x32xf32>
    %c0_5 = arith.constant 0 : index
    %c0_6 = arith.constant 0 : index
    %4 = vector.load %arg3[%c0_5, %c0_6] : memref<16x16xf32, #tpu.memory_space<vmem>>, vector<16x16xf32>
    %c0_7 = arith.constant 0 : index
    %c0_8 = arith.constant 0 : index
    %c0_9 = arith.constant 0 : index
    %5 = vector.load %arg4[%c0_7, %c0_8, %c0_9] : memref<1x1x16xf32, #tpu.memory_space<vmem>>, vector<1x1x16xf32>
    %6 = vector.shape_cast %5 : vector<1x1x16xf32> to vector<1x16xf32>
    %7 = vector.broadcast %6 : vector<1x16xf32> to vector<16x16xf32>
    %8 = arith.addf %4, %7 : vector<16x16xf32>
    %9 = vector.extract_strided_slice %1 {offsets = [0, 0], sizes = [16, 8], strides = [1, 1]} : vector<16x64xf32> to vector<16x8xf32>
    %10 = vector.extract_strided_slice %1 {offsets = [0, 32], sizes = [16, 8], strides = [1, 1]} : vector<16x64xf32> to vector<16x8xf32>
    %11 = vector.extract_strided_slice %3 {offsets = [0, 0], sizes = [16, 8], strides = [1, 1]} : vector<16x32xf32> to vector<16x8xf32>
    %cst = arith.constant dense<0.000000e+00> : vector<16x16xf32>
    %12 = tpu.matmul %9, %10, %cst {dimension_numbers = #tpu.dot_dimension_numbers<[1], [1], [0], [0], [0, 0, 1, 0], [], []>} : vector<16x8xf32>, vector<16x8xf32>, vector<16x16xf32> -> vector<16x16xf32>
    %cst_10 = arith.constant 0.353553385 : f32
    %13 = vector.broadcast %cst_10 : f32 to vector<16x16xf32>
    %14 = arith.mulf %12, %13 : vector<16x16xf32>
    %15 = arith.addf %14, %8 : vector<16x16xf32>
    %cst_11 = arith.constant dense<0xFF800000> : vector<16xf32>
    %16 = vector.multi_reduction <maximumf>, %15, %cst_11 [1] : vector<16x16xf32> to vector<16xf32>
    %17 = vector.shape_cast %16 : vector<16xf32> to vector<16x1xf32>
    %18 = vector.broadcast %17 : vector<16x1xf32> to vector<16x16xf32>
    %19 = arith.subf %15, %18 : vector<16x16xf32>
    %20 = math.exp %19 : vector<16x16xf32>
    %cst_12 = arith.constant dense<0.000000e+00> : vector<16xf32>
    %21 = vector.multi_reduction <add>, %20, %cst_12 [1] : vector<16x16xf32> to vector<16xf32>
    %22 = vector.shape_cast %21 : vector<16xf32> to vector<16x1xf32>
    %23 = tpu.reciprocal %22 : vector<16x1xf32> -> vector<16x1xf32>
    %24 = vector.broadcast %23 : vector<16x1xf32> to vector<16x16xf32>
    %25 = arith.mulf %20, %24 : vector<16x16xf32>
    %cst_13 = arith.constant dense<0.000000e+00> : vector<16x8xf32>
    %26 = tpu.matmul %25, %11, %cst_13 {dimension_numbers = #tpu.dot_dimension_numbers<[1], [0], [0], [1], [0, 0, 1, 1], [], []>} : vector<16x16xf32>, vector<16x8xf32>, vector<16x8xf32> -> vector<16x8xf32>
    %27 = vector.extract_strided_slice %1 {offsets = [0, 8], sizes = [16, 8], strides = [1, 1]} : vector<16x64xf32> to vector<16x8xf32>
    %28 = vector.extract_strided_slice %1 {offsets = [0, 40], sizes = [16, 8], strides = [1, 1]} : vector<16x64xf32> to vector<16x8xf32>
    %29 = vector.extract_strided_slice %3 {offsets = [0, 8], sizes = [16, 8], strides = [1, 1]} : vector<16x32xf32> to vector<16x8xf32>
    %cst_14 = arith.constant dense<0.000000e+00> : vector<16x16xf32>
    %30 = tpu.matmul %27, %28, %cst_14 {dimension_numbers = #tpu.dot_dimension_numbers<[1], [1], [0], [0], [0, 0, 1, 0], [], []>} : vector<16x8xf32>, vector<16x8xf32>, vector<16x16xf32> -> vector<16x16xf32>
    %cst_15 = arith.constant 0.353553385 : f32
    %31 = vector.broadcast %cst_15 : f32 to vector<16x16xf32>
    %32 = arith.mulf %30, %31 : vector<16x16xf32>
    %33 = arith.addf %32, %8 : vector<16x16xf32>
    %cst_16 = arith.constant dense<0xFF800000> : vector<16xf32>
    %34 = vector.multi_reduction <maximumf>, %33, %cst_16 [1] : vector<16x16xf32> to vector<16xf32>
    %35 = vector.shape_cast %34 : vector<16xf32> to vector<16x1xf32>
    %36 = vector.broadcast %35 : vector<16x1xf32> to vector<16x16xf32>
    %37 = arith.subf %33, %36 : vector<16x16xf32>
    %38 = math.exp %37 : vector<16x16xf32>
    %cst_17 = arith.constant dense<0.000000e+00> : vector<16xf32>
    %39 = vector.multi_reduction <add>, %38, %cst_17 [1] : vector<16x16xf32> to vector<16xf32>
    %40 = vector.shape_cast %39 : vector<16xf32> to vector<16x1xf32>
    %41 = tpu.reciprocal %40 : vector<16x1xf32> -> vector<16x1xf32>
    %42 = vector.broadcast %41 : vector<16x1xf32> to vector<16x16xf32>
    %43 = arith.mulf %38, %42 : vector<16x16xf32>
    %cst_18 = arith.constant dense<0.000000e+00> : vector<16x8xf32>
    %44 = tpu.matmul %43, %29, %cst_18 {dimension_numbers = #tpu.dot_dimension_numbers<[1], [0], [0], [1], [0, 0, 1, 1], [], []>} : vector<16x16xf32>, vector<16x8xf32>, vector<16x8xf32> -> vector<16x8xf32>
    %45 = vector.extract_strided_slice %1 {offsets = [0, 16], sizes = [16, 8], strides = [1, 1]} : vector<16x64xf32> to vector<16x8xf32>
    %46 = vector.extract_strided_slice %1 {offsets = [0, 48], sizes = [16, 8], strides = [1, 1]} : vector<16x64xf32> to vector<16x8xf32>
    %47 = vector.extract_strided_slice %3 {offsets = [0, 16], sizes = [16, 8], strides = [1, 1]} : vector<16x32xf32> to vector<16x8xf32>
    %cst_19 = arith.constant dense<0.000000e+00> : vector<16x16xf32>
    %48 = tpu.matmul %45, %46, %cst_19 {dimension_numbers = #tpu.dot_dimension_numbers<[1], [1], [0], [0], [0, 0, 1, 0], [], []>} : vector<16x8xf32>, vector<16x8xf32>, vector<16x16xf32> -> vector<16x16xf32>
    %cst_20 = arith.constant 0.353553385 : f32
    %49 = vector.broadcast %cst_20 : f32 to vector<16x16xf32>
    %50 = arith.mulf %48, %49 : vector<16x16xf32>
    %51 = arith.addf %50, %8 : vector<16x16xf32>
    %cst_21 = arith.constant dense<0xFF800000> : vector<16xf32>
    %52 = vector.multi_reduction <maximumf>, %51, %cst_21 [1] : vector<16x16xf32> to vector<16xf32>
    %53 = vector.shape_cast %52 : vector<16xf32> to vector<16x1xf32>
    %54 = vector.broadcast %53 : vector<16x1xf32> to vector<16x16xf32>
    %55 = arith.subf %51, %54 : vector<16x16xf32>
    %56 = math.exp %55 : vector<16x16xf32>
    %cst_22 = arith.constant dense<0.000000e+00> : vector<16xf32>
    %57 = vector.multi_reduction <add>, %56, %cst_22 [1] : vector<16x16xf32> to vector<16xf32>
    %58 = vector.shape_cast %57 : vector<16xf32> to vector<16x1xf32>
    %59 = tpu.reciprocal %58 : vector<16x1xf32> -> vector<16x1xf32>
    %60 = vector.broadcast %59 : vector<16x1xf32> to vector<16x16xf32>
    %61 = arith.mulf %56, %60 : vector<16x16xf32>
    %cst_23 = arith.constant dense<0.000000e+00> : vector<16x8xf32>
    %62 = tpu.matmul %61, %47, %cst_23 {dimension_numbers = #tpu.dot_dimension_numbers<[1], [0], [0], [1], [0, 0, 1, 1], [], []>} : vector<16x16xf32>, vector<16x8xf32>, vector<16x8xf32> -> vector<16x8xf32>
    %63 = vector.extract_strided_slice %1 {offsets = [0, 24], sizes = [16, 8], strides = [1, 1]} : vector<16x64xf32> to vector<16x8xf32>
    %64 = vector.extract_strided_slice %1 {offsets = [0, 56], sizes = [16, 8], strides = [1, 1]} : vector<16x64xf32> to vector<16x8xf32>
    %65 = vector.extract_strided_slice %3 {offsets = [0, 24], sizes = [16, 8], strides = [1, 1]} : vector<16x32xf32> to vector<16x8xf32>
    %cst_24 = arith.constant dense<0.000000e+00> : vector<16x16xf32>
    %66 = tpu.matmul %63, %64, %cst_24 {dimension_numbers = #tpu.dot_dimension_numbers<[1], [1], [0], [0], [0, 0, 1, 0], [], []>} : vector<16x8xf32>, vector<16x8xf32>, vector<16x16xf32> -> vector<16x16xf32>
    %cst_25 = arith.constant 0.353553385 : f32
    %67 = vector.broadcast %cst_25 : f32 to vector<16x16xf32>
    %68 = arith.mulf %66, %67 : vector<16x16xf32>
    %69 = arith.addf %68, %8 : vector<16x16xf32>
    %cst_26 = arith.constant dense<0xFF800000> : vector<16xf32>
    %70 = vector.multi_reduction <maximumf>, %69, %cst_26 [1] : vector<16x16xf32> to vector<16xf32>
    %71 = vector.shape_cast %70 : vector<16xf32> to vector<16x1xf32>
    %72 = vector.broadcast %71 : vector<16x1xf32> to vector<16x16xf32>
    %73 = arith.subf %69, %72 : vector<16x16xf32>
    %74 = math.exp %73 : vector<16x16xf32>
    %cst_27 = arith.constant dense<0.000000e+00> : vector<16xf32>
    %75 = vector.multi_reduction <add>, %74, %cst_27 [1] : vector<16x16xf32> to vector<16xf32>
    %76 = vector.shape_cast %75 : vector<16xf32> to vector<16x1xf32>
    %77 = tpu.reciprocal %76 : vector<16x1xf32> -> vector<16x1xf32>
    %78 = vector.broadcast %77 : vector<16x1xf32> to vector<16x16xf32>
    %79 = arith.mulf %74, %78 : vector<16x16xf32>
    %cst_28 = arith.constant dense<0.000000e+00> : vector<16x8xf32>
    %80 = tpu.matmul %79, %65, %cst_28 {dimension_numbers = #tpu.dot_dimension_numbers<[1], [0], [0], [1], [0, 0, 1, 1], [], []>} : vector<16x16xf32>, vector<16x8xf32>, vector<16x8xf32> -> vector<16x8xf32>
    %81 = tpu.concatenate %26, %44, %62, %80 in 1 : vector<16x8xf32>, vector<16x8xf32>, vector<16x8xf32>, vector<16x8xf32> -> vector<16x32xf32>
    %c0_29 = arith.constant 0 : index
    %c0_30 = arith.constant 0 : index
    %c0_31 = arith.constant 0 : index
    %82 = vector.load %arg5[%c0_29, %c0_30, %c0_31] : memref<1x16x32xf32, #tpu.memory_space<vmem>>, vector<1x16x32xf32>
    %83 = vector.shape_cast %82 : vector<1x16x32xf32> to vector<16x32xf32>
    %84 = vector.shape_cast %81 : vector<16x32xf32> to vector<1x16x32xf32>
    tpu.vector_store %arg5[%c0_29, %c0_30, %c0_31], %84 {strides = array<i32>} : memref<1x16x32xf32, #tpu.memory_space<vmem>>, vector<1x16x32xf32>,
    return
  }
  func.func @transform_0(%arg0: i32) -> (i32, i32, i32) {
    %c0_i32 = arith.constant 0 : i32
    %c0_i32_0 = arith.constant 0 : i32
    %c0_i32_1 = arith.constant 0 : i32
    return %arg0, %c0_i32, %c0_i32_0 : i32, i32, i32
  }
  func.func @transform_1(%arg0: i32) -> (i32, i32, i32) {
    %c0_i32 = arith.constant 0 : i32
    %c0_i32_0 = arith.constant 0 : i32
    %c0_i32_1 = arith.constant 0 : i32
    return %arg0, %c0_i32, %c0_i32_0 : i32, i32, i32
  }
  func.func @transform_2(%arg0: i32) -> (i32, i32) {
    %c0_i32 = arith.constant 0 : i32
    %c0_i32_0 = arith.constant 0 : i32
    %c0_i32_1 = arith.constant 0 : i32
    return %c0_i32, %c0_i32_0 : i32, i32
  }
  func.func @transform_3(%arg0: i32) -> (i32, i32, i32) {
    %c0_i32 = arith.constant 0 : i32
    %c0_i32_0 = arith.constant 0 : i32
    %c0_i32_1 = arith.constant 0 : i32
    return %arg0, %c0_i32, %c0_i32_0 : i32, i32, i32
  }
  func.func @transform_4(%arg0: i32) -> (i32, i32, i32) {
    %c0_i32 = arith.constant 0 : i32
    %c0_i32_0 = arith.constant 0 : i32
    %c0_i32_1 = arith.constant 0 : i32
    return %arg0, %c0_i32, %c0_i32_0 : i32, i32, i32
  }
}

module attributes {stable_mosaic.version = 11 : i64} {
  func.func @_linear_ln_kernel(%arg0: i32, %arg1: i32, %arg2: memref<32x32xf32, #tpu.memory_space<vmem>>, %arg3: memref<32x32xf32, #tpu.memory_space<vmem>>, %arg4: memref<1x32xf32, #tpu.memory_space<vmem>>, %arg5: memref<32x32xf32, #tpu.memory_space<vmem>>, %arg6: memref<1x32xf32, #tpu.memory_space<vmem>>, %arg7: memref<1x32xf32, #tpu.memory_space<vmem>>, %arg8: memref<32x32xf32, #tpu.memory_space<vmem>>, %arg9: memref<32x32xf32, #tpu.memory_space<vmem>>) attributes {dimension_semantics = [#tpu.dimension_semantics<parallel>, #tpu.dimension_semantics<arbitrary>], iteration_bounds = array<i64: 1, 1>, scalar_prefetch = 0 : i64, scratch_operands = 1 : i64, tpu.core_type = #tpu.core_type<tc>, window_params = [{transform_indices = @transform_0, window_bounds = array<i64: 32, 32>}, {transform_indices = @transform_1, window_bounds = array<i64: 32, 32>}, {pipeline_mode = #tpu.pipeline_mode<synchronous>, transform_indices = @transform_2, window_bounds = array<i64: 1, 32>}, {transform_indices = @transform_3, window_bounds = array<i64: 32, 32>}, {pipeline_mode = #tpu.pipeline_mode<synchronous>, transform_indices = @transform_4, window_bounds = array<i64: 1, 32>}, {pipeline_mode = #tpu.pipeline_mode<synchronous>, transform_indices = @transform_5, window_bounds = array<i64: 1, 32>}, {transform_indices = @transform_6, window_bounds = array<i64: 32, 32>}]} {
    %c0_i32 = arith.constant 0 : i32
    %0 = arith.cmpi eq, %arg1, %c0_i32 : i32
    %1 = arith.extui %0 : i1 to i32
    %c0_i32_0 = arith.constant 0 : i32
    %2 = arith.cmpi ne, %1, %c0_i32_0 : i32
    scf.if %2 {
      %cst_10 = arith.constant 0.000000e+00 : f32
      %12 = vector.broadcast %cst_10 : f32 to vector<32x32xf32>
      %c0_11 = arith.constant 0 : index
      %c0_12 = arith.constant 0 : index
      %13 = vector.load %arg9[%c0_11, %c0_12] : memref<32x32xf32, #tpu.memory_space<vmem>>, vector<32x32xf32>
      tpu.vector_store %arg9[%c0_11, %c0_12], %12 {strides = array<i32>} : memref<32x32xf32, #tpu.memory_space<vmem>>, vector<32x32xf32>,
    } else {
    }
    %c0 = arith.constant 0 : index
    %c0_1 = arith.constant 0 : index
    %3 = vector.load %arg9[%c0, %c0_1] : memref<32x32xf32, #tpu.memory_space<vmem>>, vector<32x32xf32>
    %c0_2 = arith.constant 0 : index
    %c0_3 = arith.constant 0 : index
    %4 = vector.load %arg2[%c0_2, %c0_3] : memref<32x32xf32, #tpu.memory_space<vmem>>, vector<32x32xf32>
    %c0_4 = arith.constant 0 : index
    %c0_5 = arith.constant 0 : index
    %5 = vector.load %arg3[%c0_4, %c0_5] : memref<32x32xf32, #tpu.memory_space<vmem>>, vector<32x32xf32>
    %cst = arith.constant dense<0.000000e+00> : vector<32x32xf32>
    %6 = tpu.matmul %4, %5, %cst {dimension_numbers = #tpu.dot_dimension_numbers<[1], [0], [0], [1], [0, 0, 1, 1], [], []>} : vector<32x32xf32>, vector<32x32xf32>, vector<32x32xf32> -> vector<32x32xf32>
    %7 = arith.addf %3, %6 : vector<32x32xf32>
    %c0_6 = arith.constant 0 : index
    %c0_7 = arith.constant 0 : index
    %8 = vector.load %arg9[%c0_6, %c0_7] : memref<32x32xf32, #tpu.memory_space<vmem>>, vector<32x32xf32>
    tpu.vector_store %arg9[%c0_6, %c0_7], %7 {strides = array<i32>} : memref<32x32xf32, #tpu.memory_space<vmem>>, vector<32x32xf32>,
    %c0_i32_8 = arith.constant 0 : i32
    %9 = arith.cmpi eq, %arg1, %c0_i32_8 : i32
    %10 = arith.extui %9 : i1 to i32
    %c0_i32_9 = arith.constant 0 : i32
    %11 = arith.cmpi ne, %10, %c0_i32_9 : i32
    scf.if %11 {
      %c0_10 = arith.constant 0 : index
      %c0_11 = arith.constant 0 : index
      %12 = vector.load %arg9[%c0_10, %c0_11] : memref<32x32xf32, #tpu.memory_space<vmem>>, vector<32x32xf32>
      %c0_12 = arith.constant 0 : index
      %c0_13 = arith.constant 0 : index
      %13 = vector.load %arg4[%c0_12, %c0_13] : memref<1x32xf32, #tpu.memory_space<vmem>>, vector<1x32xf32>
      %14 = vector.broadcast %13 : vector<1x32xf32> to vector<32x32xf32>
      %15 = arith.addf %12, %14 : vector<32x32xf32>
      %c0_14 = arith.constant 0 : index
      %c0_15 = arith.constant 0 : index
      %16 = vector.load %arg5[%c0_14, %c0_15] : memref<32x32xf32, #tpu.memory_space<vmem>>, vector<32x32xf32>
      %17 = arith.addf %15, %16 : vector<32x32xf32>
      %cst_16 = arith.constant dense<0.000000e+00> : vector<32xf32>
      %18 = vector.multi_reduction <add>, %17, %cst_16 [1] : vector<32x32xf32> to vector<32xf32>
      %19 = vector.shape_cast %18 : vector<32xf32> to vector<32x1xf32>
      %cst_17 = arith.constant 3.200000e+01 : f32
      %20 = vector.broadcast %cst_17 : f32 to vector<32x1xf32>
      %21 = arith.divf %19, %20 : vector<32x1xf32>
      %22 = vector.broadcast %21 : vector<32x1xf32> to vector<32x32xf32>
      %23 = arith.subf %17, %22 : vector<32x32xf32>
      %24 = arith.mulf %23, %23 : vector<32x32xf32>
      %cst_18 = arith.constant dense<0.000000e+00> : vector<32xf32>
      %25 = vector.multi_reduction <add>, %24, %cst_18 [1] : vector<32x32xf32> to vector<32xf32>
      %26 = vector.shape_cast %25 : vector<32xf32> to vector<32x1xf32>
      %cst_19 = arith.constant 3.200000e+01 : f32
      %27 = vector.broadcast %cst_19 : f32 to vector<32x1xf32>
      %28 = arith.divf %26, %27 : vector<32x1xf32>
      %29 = vector.broadcast %21 : vector<32x1xf32> to vector<32x32xf32>
      %30 = arith.subf %17, %29 : vector<32x32xf32>
      %cst_20 = arith.constant 9.99999974E-6 : f32
      %31 = vector.broadcast %cst_20 : f32 to vector<32x1xf32>
      %32 = arith.addf %28, %31 : vector<32x1xf32>
      %33 = math.rsqrt %32 : vector<32x1xf32>
      %34 = vector.broadcast %33 : vector<32x1xf32> to vector<32x32xf32>
      %35 = arith.mulf %30, %34 : vector<32x32xf32>
      %c0_21 = arith.constant 0 : index
      %c0_22 = arith.constant 0 : index
      %36 = vector.load %arg6[%c0_21, %c0_22] : memref<1x32xf32, #tpu.memory_space<vmem>>, vector<1x32xf32>
      %37 = vector.broadcast %36 : vector<1x32xf32> to vector<32x32xf32>
      %38 = arith.mulf %35, %37 : vector<32x32xf32>
      %c0_23 = arith.constant 0 : index
      %c0_24 = arith.constant 0 : index
      %39 = vector.load %arg7[%c0_23, %c0_24] : memref<1x32xf32, #tpu.memory_space<vmem>>, vector<1x32xf32>
      %40 = vector.broadcast %39 : vector<1x32xf32> to vector<32x32xf32>
      %41 = arith.addf %38, %40 : vector<32x32xf32>
      %c0_25 = arith.constant 0 : index
      %c0_26 = arith.constant 0 : index
      %42 = vector.load %arg8[%c0_25, %c0_26] : memref<32x32xf32, #tpu.memory_space<vmem>>, vector<32x32xf32>
      tpu.vector_store %arg8[%c0_25, %c0_26], %41 {strides = array<i32>} : memref<32x32xf32, #tpu.memory_space<vmem>>, vector<32x32xf32>,
    } else {
    }
    return
  }
  func.func @transform_0(%arg0: i32, %arg1: i32) -> (i32, i32) {
    %c0_i32 = arith.constant 0 : i32
    return %arg0, %arg1 : i32, i32
  }
  func.func @transform_1(%arg0: i32, %arg1: i32) -> (i32, i32) {
    %c0_i32 = arith.constant 0 : i32
    %c0_i32_0 = arith.constant 0 : i32
    return %arg1, %c0_i32 : i32, i32
  }
  func.func @transform_2(%arg0: i32, %arg1: i32) -> (i32, i32) {
    %c0_i32 = arith.constant 0 : i32
    %c0_i32_0 = arith.constant 0 : i32
    %c0_i32_1 = arith.constant 0 : i32
    return %c0_i32, %c0_i32_0 : i32, i32
  }
  func.func @transform_3(%arg0: i32, %arg1: i32) -> (i32, i32) {
    %c0_i32 = arith.constant 0 : i32
    %c0_i32_0 = arith.constant 0 : i32
    return %arg0, %c0_i32 : i32, i32
  }
  func.func @transform_4(%arg0: i32, %arg1: i32) -> (i32, i32) {
    %c0_i32 = arith.constant 0 : i32
    %c0_i32_0 = arith.constant 0 : i32
    %c0_i32_1 = arith.constant 0 : i32
    return %c0_i32, %c0_i32_0 : i32, i32
  }
  func.func @transform_5(%arg0: i32, %arg1: i32) -> (i32, i32) {
    %c0_i32 = arith.constant 0 : i32
    %c0_i32_0 = arith.constant 0 : i32
    %c0_i32_1 = arith.constant 0 : i32
    return %c0_i32, %c0_i32_0 : i32, i32
  }
  func.func @transform_6(%arg0: i32, %arg1: i32) -> (i32, i32) {
    %c0_i32 = arith.constant 0 : i32
    %c0_i32_0 = arith.constant 0 : i32
    return %arg0, %c0_i32 : i32, i32
  }
}

module attributes {stable_mosaic.version = 11 : i64} {
  func.func @_ffn_ln_kernel(%arg0: i32, %arg1: memref<32x32xf32, #tpu.memory_space<vmem>>, %arg2: memref<32x64xf32, #tpu.memory_space<vmem>>, %arg3: memref<1x64xf32, #tpu.memory_space<vmem>>, %arg4: memref<64x32xf32, #tpu.memory_space<vmem>>, %arg5: memref<1x32xf32, #tpu.memory_space<vmem>>, %arg6: memref<32x32xf32, #tpu.memory_space<vmem>>, %arg7: memref<1x32xf32, #tpu.memory_space<vmem>>, %arg8: memref<1x32xf32, #tpu.memory_space<vmem>>, %arg9: memref<32x32xf32, #tpu.memory_space<vmem>>) attributes {dimension_semantics = [#tpu.dimension_semantics<parallel>], iteration_bounds = array<i64: 1>, scalar_prefetch = 0 : i64, scratch_operands = 0 : i64, tpu.core_type = #tpu.core_type<tc>, window_params = [{transform_indices = @transform_0, window_bounds = array<i64: 32, 32>}, {pipeline_mode = #tpu.pipeline_mode<synchronous>, transform_indices = @transform_1, window_bounds = array<i64: 32, 64>}, {pipeline_mode = #tpu.pipeline_mode<synchronous>, transform_indices = @transform_2, window_bounds = array<i64: 1, 64>}, {pipeline_mode = #tpu.pipeline_mode<synchronous>, transform_indices = @transform_3, window_bounds = array<i64: 64, 32>}, {pipeline_mode = #tpu.pipeline_mode<synchronous>, transform_indices = @transform_4, window_bounds = array<i64: 1, 32>}, {transform_indices = @transform_5, window_bounds = array<i64: 32, 32>}, {pipeline_mode = #tpu.pipeline_mode<synchronous>, transform_indices = @transform_6, window_bounds = array<i64: 1, 32>}, {pipeline_mode = #tpu.pipeline_mode<synchronous>, transform_indices = @transform_7, window_bounds = array<i64: 1, 32>}, {transform_indices = @transform_8, window_bounds = array<i64: 32, 32>}]} {
    %c0 = arith.constant 0 : index
    %c0_0 = arith.constant 0 : index
    %0 = vector.load %arg1[%c0, %c0_0] : memref<32x32xf32, #tpu.memory_space<vmem>>, vector<32x32xf32>
    %c0_1 = arith.constant 0 : index
    %c0_2 = arith.constant 0 : index
    %1 = vector.load %arg2[%c0_1, %c0_2] : memref<32x64xf32, #tpu.memory_space<vmem>>, vector<32x64xf32>
    %cst = arith.constant dense<0.000000e+00> : vector<32x64xf32>
    %2 = tpu.matmul %0, %1, %cst {dimension_numbers = #tpu.dot_dimension_numbers<[1], [0], [0], [1], [0, 0, 1, 1], [], []>} : vector<32x32xf32>, vector<32x64xf32>, vector<32x64xf32> -> vector<32x64xf32>
    %c0_3 = arith.constant 0 : index
    %c0_4 = arith.constant 0 : index
    %3 = vector.load %arg3[%c0_3, %c0_4] : memref<1x64xf32, #tpu.memory_space<vmem>>, vector<1x64xf32>
    %4 = vector.broadcast %3 : vector<1x64xf32> to vector<32x64xf32>
    %5 = arith.addf %2, %4 : vector<32x64xf32>
    %cst_5 = arith.constant 0.000000e+00 : f32
    %6 = vector.broadcast %cst_5 : f32 to vector<32x64xf32>
    %7 = arith.maximumf %5, %6 : vector<32x64xf32>
    %c0_6 = arith.constant 0 : index
    %c0_7 = arith.constant 0 : index
    %8 = vector.load %arg4[%c0_6, %c0_7] : memref<64x32xf32, #tpu.memory_space<vmem>>, vector<64x32xf32>
    %cst_8 = arith.constant dense<0.000000e+00> : vector<32x32xf32>
    %9 = tpu.matmul %7, %8, %cst_8 {dimension_numbers = #tpu.dot_dimension_numbers<[1], [0], [0], [1], [0, 0, 1, 1], [], []>} : vector<32x64xf32>, vector<64x32xf32>, vector<32x32xf32> -> vector<32x32xf32>
    %c0_9 = arith.constant 0 : index
    %c0_10 = arith.constant 0 : index
    %10 = vector.load %arg5[%c0_9, %c0_10] : memref<1x32xf32, #tpu.memory_space<vmem>>, vector<1x32xf32>
    %11 = vector.broadcast %10 : vector<1x32xf32> to vector<32x32xf32>
    %12 = arith.addf %9, %11 : vector<32x32xf32>
    %c0_11 = arith.constant 0 : index
    %c0_12 = arith.constant 0 : index
    %13 = vector.load %arg6[%c0_11, %c0_12] : memref<32x32xf32, #tpu.memory_space<vmem>>, vector<32x32xf32>
    %14 = arith.addf %12, %13 : vector<32x32xf32>
    %cst_13 = arith.constant dense<0.000000e+00> : vector<32xf32>
    %15 = vector.multi_reduction <add>, %14, %cst_13 [1] : vector<32x32xf32> to vector<32xf32>
    %16 = vector.shape_cast %15 : vector<32xf32> to vector<32x1xf32>
    %cst_14 = arith.constant 3.200000e+01 : f32
    %17 = vector.broadcast %cst_14 : f32 to vector<32x1xf32>
    %18 = arith.divf %16, %17 : vector<32x1xf32>
    %19 = vector.broadcast %18 : vector<32x1xf32> to vector<32x32xf32>
    %20 = arith.subf %14, %19 : vector<32x32xf32>
    %21 = arith.mulf %20, %20 : vector<32x32xf32>
    %cst_15 = arith.constant dense<0.000000e+00> : vector<32xf32>
    %22 = vector.multi_reduction <add>, %21, %cst_15 [1] : vector<32x32xf32> to vector<32xf32>
    %23 = vector.shape_cast %22 : vector<32xf32> to vector<32x1xf32>
    %cst_16 = arith.constant 3.200000e+01 : f32
    %24 = vector.broadcast %cst_16 : f32 to vector<32x1xf32>
    %25 = arith.divf %23, %24 : vector<32x1xf32>
    %26 = vector.broadcast %18 : vector<32x1xf32> to vector<32x32xf32>
    %27 = arith.subf %14, %26 : vector<32x32xf32>
    %cst_17 = arith.constant 9.99999974E-6 : f32
    %28 = vector.broadcast %cst_17 : f32 to vector<32x1xf32>
    %29 = arith.addf %25, %28 : vector<32x1xf32>
    %30 = math.rsqrt %29 : vector<32x1xf32>
    %31 = vector.broadcast %30 : vector<32x1xf32> to vector<32x32xf32>
    %32 = arith.mulf %27, %31 : vector<32x32xf32>
    %c0_18 = arith.constant 0 : index
    %c0_19 = arith.constant 0 : index
    %33 = vector.load %arg7[%c0_18, %c0_19] : memref<1x32xf32, #tpu.memory_space<vmem>>, vector<1x32xf32>
    %34 = vector.broadcast %33 : vector<1x32xf32> to vector<32x32xf32>
    %35 = arith.mulf %32, %34 : vector<32x32xf32>
    %c0_20 = arith.constant 0 : index
    %c0_21 = arith.constant 0 : index
    %36 = vector.load %arg8[%c0_20, %c0_21] : memref<1x32xf32, #tpu.memory_space<vmem>>, vector<1x32xf32>
    %37 = vector.broadcast %36 : vector<1x32xf32> to vector<32x32xf32>
    %38 = arith.addf %35, %37 : vector<32x32xf32>
    %c0_22 = arith.constant 0 : index
    %c0_23 = arith.constant 0 : index
    %39 = vector.load %arg9[%c0_22, %c0_23] : memref<32x32xf32, #tpu.memory_space<vmem>>, vector<32x32xf32>
    tpu.vector_store %arg9[%c0_22, %c0_23], %38 {strides = array<i32>} : memref<32x32xf32, #tpu.memory_space<vmem>>, vector<32x32xf32>,
    return
  }
  func.func @transform_0(%arg0: i32) -> (i32, i32) {
    %c0_i32 = arith.constant 0 : i32
    %c0_i32_0 = arith.constant 0 : i32
    return %arg0, %c0_i32 : i32, i32
  }
  func.func @transform_1(%arg0: i32) -> (i32, i32) {
    %c0_i32 = arith.constant 0 : i32
    %c0_i32_0 = arith.constant 0 : i32
    %c0_i32_1 = arith.constant 0 : i32
    return %c0_i32, %c0_i32_0 : i32, i32
  }
  func.func @transform_2(%arg0: i32) -> (i32, i32) {
    %c0_i32 = arith.constant 0 : i32
    %c0_i32_0 = arith.constant 0 : i32
    %c0_i32_1 = arith.constant 0 : i32
    return %c0_i32, %c0_i32_0 : i32, i32
  }
  func.func @transform_3(%arg0: i32) -> (i32, i32) {
    %c0_i32 = arith.constant 0 : i32
    %c0_i32_0 = arith.constant 0 : i32
    %c0_i32_1 = arith.constant 0 : i32
    return %c0_i32, %c0_i32_0 : i32, i32
  }
  func.func @transform_4(%arg0: i32) -> (i32, i32) {
    %c0_i32 = arith.constant 0 : i32
    %c0_i32_0 = arith.constant 0 : i32
    %c0_i32_1 = arith.constant 0 : i32
    return %c0_i32, %c0_i32_0 : i32, i32
  }
  func.func @transform_5(%arg0: i32) -> (i32, i32) {
    %c0_i32 = arith.constant 0 : i32
    %c0_i32_0 = arith.constant 0 : i32
    return %arg0, %c0_i32 : i32, i32
  }
  func.func @transform_6(%arg0: i32) -> (i32, i32) {
    %c0_i32 = arith.constant 0 : i32
    %c0_i32_0 = arith.constant 0 : i32
    %c0_i32_1 = arith.constant 0 : i32
    return %c0_i32, %c0_i32_0 : i32, i32
  }
  func.func @transform_7(%arg0: i32) -> (i32, i32) {
    %c0_i32 = arith.constant 0 : i32
    %c0_i32_0 = arith.constant 0 : i32
    %c0_i32_1 = arith.constant 0 : i32
    return %c0_i32, %c0_i32_0 : i32, i32
  }
  func.func @transform_8(%arg0: i32) -> (i32, i32) {
    %c0_i32 = arith.constant 0 : i32
    %c0_i32_0 = arith.constant 0 : i32
    return %arg0, %c0_i32 : i32, i32
  }
}

module attributes {stable_mosaic.version = 11 : i64} {
  func.func @_ln_kernel(%arg0: i32, %arg1: memref<32x32xf32, #tpu.memory_space<vmem>>, %arg2: memref<1x32xf32, #tpu.memory_space<vmem>>, %arg3: memref<1x32xf32, #tpu.memory_space<vmem>>, %arg4: memref<32x32xf32, #tpu.memory_space<vmem>>) attributes {dimension_semantics = [#tpu.dimension_semantics<parallel>], iteration_bounds = array<i64: 1>, scalar_prefetch = 0 : i64, scratch_operands = 0 : i64, tpu.core_type = #tpu.core_type<tc>, window_params = [{transform_indices = @transform_0, window_bounds = array<i64: 32, 32>}, {pipeline_mode = #tpu.pipeline_mode<synchronous>, transform_indices = @transform_1, window_bounds = array<i64: 1, 32>}, {pipeline_mode = #tpu.pipeline_mode<synchronous>, transform_indices = @transform_2, window_bounds = array<i64: 1, 32>}, {transform_indices = @transform_3, window_bounds = array<i64: 32, 32>}]} {
    %c0 = arith.constant 0 : index
    %c0_0 = arith.constant 0 : index
    %0 = vector.load %arg1[%c0, %c0_0] : memref<32x32xf32, #tpu.memory_space<vmem>>, vector<32x32xf32>
    %cst = arith.constant dense<0.000000e+00> : vector<32xf32>
    %1 = vector.multi_reduction <add>, %0, %cst [1] : vector<32x32xf32> to vector<32xf32>
    %2 = vector.shape_cast %1 : vector<32xf32> to vector<32x1xf32>
    %cst_1 = arith.constant 3.200000e+01 : f32
    %3 = vector.broadcast %cst_1 : f32 to vector<32x1xf32>
    %4 = arith.divf %2, %3 : vector<32x1xf32>
    %5 = vector.broadcast %4 : vector<32x1xf32> to vector<32x32xf32>
    %6 = arith.subf %0, %5 : vector<32x32xf32>
    %7 = arith.mulf %6, %6 : vector<32x32xf32>
    %cst_2 = arith.constant dense<0.000000e+00> : vector<32xf32>
    %8 = vector.multi_reduction <add>, %7, %cst_2 [1] : vector<32x32xf32> to vector<32xf32>
    %9 = vector.shape_cast %8 : vector<32xf32> to vector<32x1xf32>
    %cst_3 = arith.constant 3.200000e+01 : f32
    %10 = vector.broadcast %cst_3 : f32 to vector<32x1xf32>
    %11 = arith.divf %9, %10 : vector<32x1xf32>
    %12 = vector.broadcast %4 : vector<32x1xf32> to vector<32x32xf32>
    %13 = arith.subf %0, %12 : vector<32x32xf32>
    %cst_4 = arith.constant 9.99999974E-6 : f32
    %14 = vector.broadcast %cst_4 : f32 to vector<32x1xf32>
    %15 = arith.addf %11, %14 : vector<32x1xf32>
    %16 = math.rsqrt %15 : vector<32x1xf32>
    %17 = vector.broadcast %16 : vector<32x1xf32> to vector<32x32xf32>
    %18 = arith.mulf %13, %17 : vector<32x32xf32>
    %c0_5 = arith.constant 0 : index
    %c0_6 = arith.constant 0 : index
    %19 = vector.load %arg2[%c0_5, %c0_6] : memref<1x32xf32, #tpu.memory_space<vmem>>, vector<1x32xf32>
    %20 = vector.broadcast %19 : vector<1x32xf32> to vector<32x32xf32>
    %21 = arith.mulf %18, %20 : vector<32x32xf32>
    %c0_7 = arith.constant 0 : index
    %c0_8 = arith.constant 0 : index
    %22 = vector.load %arg3[%c0_7, %c0_8] : memref<1x32xf32, #tpu.memory_space<vmem>>, vector<1x32xf32>
    %23 = vector.broadcast %22 : vector<1x32xf32> to vector<32x32xf32>
    %24 = arith.addf %21, %23 : vector<32x32xf32>
    %c0_9 = arith.constant 0 : index
    %c0_10 = arith.constant 0 : index
    %25 = vector.load %arg4[%c0_9, %c0_10] : memref<32x32xf32, #tpu.memory_space<vmem>>, vector<32x32xf32>
    tpu.vector_store %arg4[%c0_9, %c0_10], %24 {strides = array<i32>} : memref<32x32xf32, #tpu.memory_space<vmem>>, vector<32x32xf32>,
    return
  }
  func.func @transform_0(%arg0: i32) -> (i32, i32) {
    %c0_i32 = arith.constant 0 : i32
    %c0_i32_0 = arith.constant 0 : i32
    return %arg0, %c0_i32 : i32, i32
  }
  func.func @transform_1(%arg0: i32) -> (i32, i32) {
    %c0_i32 = arith.constant 0 : i32
    %c0_i32_0 = arith.constant 0 : i32
    %c0_i32_1 = arith.constant 0 : i32
    return %c0_i32, %c0_i32_0 : i32, i32
  }
  func.func @transform_2(%arg0: i32) -> (i32, i32) {
    %c0_i32 = arith.constant 0 : i32
    %c0_i32_0 = arith.constant 0 : i32
    %c0_i32_1 = arith.constant 0 : i32
    return %c0_i32, %c0_i32_0 : i32, i32
  }
  func.func @transform_3(%arg0: i32) -> (i32, i32) {
    %c0_i32 = arith.constant 0 : i32
    %c0_i32_0 = arith.constant 0 : i32
    return %arg0, %c0_i32 : i32, i32
  }
}

</mosaic_0001>

<bundles_post_ra>
// kernel: _lambda_.11
= control target key start
LH: loop header
LB: loop body
LE: loop exit
PB: predicated region body
PF: predicated region fallthrough
CT: control target
= control target key end

     0   :  { %vm18_vm0 = vcmask 523264   ;;  %v127_v2 = vmov 0.0   ;;  %vm35_vm1 = vcmask 261120   ;;  %s199_s1 = inlined_call_operand.vmem [shape: f32[32,64], index: 1, kind: input, shape index: {}]   ;;  %s200_s2 = inlined_call_operand.vmem [shape: f32[1,64], index: 2, kind: input, shape index: {}]   ;;  %s201_s0 = inlined_call_operand.vmem [shape: f32[32,32], index: 0, kind: input, shape index: {}]   ;;  %s202_s3 = inlined_call_operand.vmem [shape: f32[32,64], index: 3, kind: output, shape index: {}]  }
   0x1   :  { %v34_v0 = vld [vmem:[%s199_s1 + $0x18] sm:$0xff]  ;;  %v33_v1 = vld [vmem:[%s199_s1 + $0x10] sm:$0xff]  ;;  %19 = vst.msk [vmem:[#allocation2] sm:$0xff] %vm18_vm0, %v127_v2  ;;  %v32_v3 = vld [vmem:[%s199_s1 + $0x8] sm:$0xff] }
   0x2   :  { %114 = vmatpush.msra.mxu2 %v34_v0  ;;  %115 = vmatpush.msra.mxu3 %v34_v0  ;;  %20 = vst.msk [vmem:[#allocation2 + $0x8] sm:$0xff] %vm18_vm0, %v127_v2  ;;  %v31_v4 = vld [vmem:[%s199_s1] sm:$0xff]  ;;  %v29_v5 = vld [vmem:[%s201_s0 + $0x10] sm:$0xff]  ;;  %v30_v6 = vld [vmem:[%s201_s0 + $0x18] sm:$0xff] }
   0x3   :  { %60 = vmatpush.msra.mxu0 %v34_v0  ;;  %113 = vmatpush.msra.mxu1 %v34_v0  ;;  %21 = vst.msk [vmem:[#allocation2 + $0x10] sm:$0xff] %vm18_vm0, %v127_v2  ;;  %v27_v7 = vld [vmem:[%s201_s0] sm:$0xff]  ;;  %v28_v8 = vld [vmem:[%s201_s0 + $0x8] sm:$0xff] }
   0x4   :  { %117 = vmatpush.msra.mxu2 %v33_v1  ;;  %118 = vmatpush.msra.mxu3 %v33_v1  ;;  %22 = vst.msk [vmem:[#allocation2 + $0x18] sm:$0xff] %vm18_vm0, %v127_v2  ;;  %v126_v21 = vld [vmem:[%s200_s2] ss:$0 sm:$0xff] }
   0x5   :  { %61 = vmatpush.msra.mxu0 %v33_v1  ;;  %116 = vmatpush.msra.mxu1 %v33_v1 }
   0x6   :  { %120 = vmatpush.msra.mxu2 %v32_v3  ;;  %121 = vmatpush.msra.mxu3 %v32_v3 }
   0x7   :  { %62 = vmatpush.msra.mxu0 %v32_v3  ;;  %119 = vmatpush.msra.mxu1 %v32_v3 }
   0x8   :  { %123 = vmatpush.msra.mxu2 %v31_v4  ;;  %124 = vmatpush.msra.mxu3 %v31_v4  ;;  %v23_v9 = vld [vmem:[#allocation2] sm:$0xff] }
   0x9   :  { %111 = vmatmul.msk.f32.vlgmr.msra.gmra.mxu2 %vm35_vm1, %v29_v5  ;;  %112 = vmatmul.msk.f32.vlgmr.msra.gmra.mxu3 %vm35_vm1, %v30_v6  ;;  %v24_v10 = vld [vmem:[#allocation2 + $0x8] sm:$0xff] }
   0xa   :  { %63 = vmatpush.msra.mxu0 %v31_v4  ;;  %122 = vmatpush.msra.mxu1 %v31_v4  ;;  %v25_v15 = vld [vmem:[#allocation2 + $0x10] sm:$0xff] }
   0xb   :  { %109 = vmatmul.msk.f32.vlgmr.msra.gmra.mxu0 %vm35_vm1, %v27_v7  ;;  %110 = vmatmul.msk.f32.vlgmr.msra.gmra.mxu1 %vm35_vm1, %v28_v8  ;;  %v26_v16 = vld [vmem:[#allocation2 + $0x18] sm:$0xff] }
  0x88   :  { %v65_v11 = vpop.f32.mrf.mxu0  ;;  %v68_v12 = vpop.f32.mrf.mxu1 }
  0x89   :  { %v77_v13 = vadd.f32 %v65_v11, %v23_v9  ;;  %v78_v14 = vadd.f32 %v68_v12, %v24_v10 }
  0x8b   :  { %82 = vst.msk [vmem:[#allocation2] sm:$0xff] %vm18_vm0, %v77_v13 }
  0x8c   :  { %83 = vst.msk [vmem:[#allocation2 + $0x8] sm:$0xff] %vm18_vm0, %v78_v14  ;;  %v71_v17 = vpop.f32.mrf.mxu2  ;;  %v74_v18 = vpop.f32.mrf.mxu3 }
  0x8d   :  { %v79_v19 = vadd.f32 %v71_v17, %v25_v15  ;;  %v80_v20 = vadd.f32 %v74_v18, %v26_v16 }
  0x8f   :  { %84 = vst.msk [vmem:[#allocation2 + $0x10] sm:$0xff] %vm18_vm0, %v79_v19 }
  0x90   :  { %85 = vst.msk [vmem:[#allocation2 + $0x18] sm:$0xff] %vm18_vm0, %v80_v20 }
  0x92   :  { %v89_v22 = vld [vmem:[#allocation2] sm:$0xff] }
  0x93   :  { %v97_v23 = vadd.f32 %v126_v21, %v89_v22  ;;  %v90_v24 = vld [vmem:[#allocation2 + $0x8] sm:$0xff] }
  0x94   :  { %v98_v25 = vadd.f32 %v126_v21, %v90_v24 }
  0x95   :  { %101 = vst.msk [vmem:[%s202_s3] sm:$0xff] %vm18_vm0, %v97_v23 }
  0x96   :  { %102 = vst.msk [vmem:[%s202_s3 + $0x8] sm:$0xff] %vm18_vm0, %v98_v25  ;;  %v91_v26 = vld [vmem:[#allocation2 + $0x10] sm:$0xff] }
  0x97   :  { %v99_v27 = vadd.f32 %v126_v21, %v91_v26  ;;  %v92_v28 = vld [vmem:[#allocation2 + $0x18] sm:$0xff] }
  0x98   :  { %v100_v29 = vadd.f32 %v126_v21, %v92_v28 }
  0x99   :  { %103 = vst.msk [vmem:[%s202_s3 + $0x10] sm:$0xff] %vm18_vm0, %v99_v27 }
  0x9a   :  { %104 = vst.msk [vmem:[%s202_s3 + $0x18] sm:$0xff] %vm18_vm0, %v100_v29 }

// kernel: _lambda_.12
= control target key start
LH: loop header
LB: loop body
LE: loop exit
PB: predicated region body
PF: predicated region fallthrough
CT: control target
= control target key end

     0   :  { %vm18_vm0 = vcmask 261120   ;;  %v126_v2 = vmov 0.0   ;;  %s202_s1 = inlined_call_operand.vmem [shape: f32[32,32], index: 1, kind: input, shape index: {}]   ;;  %s203_s2 = inlined_call_operand.vmem [shape: f32[1,32], index: 2, kind: input, shape index: {}]   ;;  %s204_s0 = inlined_call_operand.vmem [shape: f32[32,32], index: 0, kind: input, shape index: {}]   ;;  %s205_s3 = inlined_call_operand.vmem [shape: f32[32,32], index: 3, kind: output, shape index: {}]  }
   0x1   :  { %v34_v0 = vld [vmem:[%s202_s1 + $0x18] sm:$0xff]  ;;  %v33_v1 = vld [vmem:[%s202_s1 + $0x10] sm:$0xff]  ;;  %19 = vst.msk [vmem:[#allocation2] sm:$0xff] %vm18_vm0, %v126_v2  ;;  %v32_v3 = vld [vmem:[%s202_s1 + $0x8] sm:$0xff] }
   0x2   :  { %113 = vmatpush.msra.mxu2 %v34_v0  ;;  %114 = vmatpush.msra.mxu3 %v34_v0  ;;  %20 = vst.msk [vmem:[#allocation2 + $0x8] sm:$0xff] %vm18_vm0, %v126_v2  ;;  %v31_v4 = vld [vmem:[%s202_s1] sm:$0xff]  ;;  %v29_v5 = vld [vmem:[%s204_s0 + $0x10] sm:$0xff]  ;;  %v30_v6 = vld [vmem:[%s204_s0 + $0x18] sm:$0xff] }
   0x3   :  { %60 = vmatpush.msra.mxu0 %v34_v0  ;;  %112 = vmatpush.msra.mxu1 %v34_v0  ;;  %21 = vst.msk [vmem:[#allocation2 + $0x10] sm:$0xff] %vm18_vm0, %v126_v2  ;;  %v27_v7 = vld [vmem:[%s204_s0] sm:$0xff]  ;;  %v28_v8 = vld [vmem:[%s204_s0 + $0x8] sm:$0xff] }
   0x4   :  { %116 = vmatpush.msra.mxu2 %v33_v1  ;;  %117 = vmatpush.msra.mxu3 %v33_v1  ;;  %22 = vst.msk [vmem:[#allocation2 + $0x18] sm:$0xff] %vm18_vm0, %v126_v2  ;;  %v125_v21 = vld [vmem:[%s203_s2] ss:$0 sm:$0xff] }
   0x5   :  { %61 = vmatpush.msra.mxu0 %v33_v1  ;;  %115 = vmatpush.msra.mxu1 %v33_v1 }
   0x6   :  { %119 = vmatpush.msra.mxu2 %v32_v3  ;;  %120 = vmatpush.msra.mxu3 %v32_v3 }
   0x7   :  { %62 = vmatpush.msra.mxu0 %v32_v3  ;;  %118 = vmatpush.msra.mxu1 %v32_v3 }
   0x8   :  { %122 = vmatpush.msra.mxu2 %v31_v4  ;;  %123 = vmatpush.msra.mxu3 %v31_v4  ;;  %v23_v9 = vld [vmem:[#allocation2] sm:$0xff] }
   0x9   :  { %110 = vmatmul.msk.f32.vlgmr.msra.gmra.mxu2 %vm18_vm0, %v29_v5  ;;  %111 = vmatmul.msk.f32.vlgmr.msra.gmra.mxu3 %vm18_vm0, %v30_v6  ;;  %v24_v10 = vld [vmem:[#allocation2 + $0x8] sm:$0xff] }
   0xa   :  { %63 = vmatpush.msra.mxu0 %v31_v4  ;;  %121 = vmatpush.msra.mxu1 %v31_v4  ;;  %v25_v15 = vld [vmem:[#allocation2 + $0x10] sm:$0xff] }
   0xb   :  { %108 = vmatmul.msk.f32.vlgmr.msra.gmra.mxu0 %vm18_vm0, %v27_v7  ;;  %109 = vmatmul.msk.f32.vlgmr.msra.gmra.mxu1 %vm18_vm0, %v28_v8  ;;  %v26_v16 = vld [vmem:[#allocation2 + $0x18] sm:$0xff] }
  0x88   :  { %v65_v11 = vpop.f32.mrf.mxu0  ;;  %v68_v12 = vpop.f32.mrf.mxu1 }
  0x89   :  { %v77_v13 = vadd.f32 %v65_v11, %v23_v9  ;;  %v78_v14 = vadd.f32 %v68_v12, %v24_v10 }
  0x8b   :  { %81 = vst.msk [vmem:[#allocation2] sm:$0xff] %vm18_vm0, %v77_v13 }
  0x8c   :  { %82 = vst.msk [vmem:[#allocation2 + $0x8] sm:$0xff] %vm18_vm0, %v78_v14  ;;  %v71_v17 = vpop.f32.mrf.mxu2  ;;  %v74_v18 = vpop.f32.mrf.mxu3 }
  0x8d   :  { %v79_v19 = vadd.f32 %v71_v17, %v25_v15  ;;  %v80_v20 = vadd.f32 %v74_v18, %v26_v16 }
  0x8f   :  { %83 = vst.msk [vmem:[#allocation2 + $0x10] sm:$0xff] %vm18_vm0, %v79_v19 }
  0x90   :  { %84 = vst.msk [vmem:[#allocation2 + $0x18] sm:$0xff] %vm18_vm0, %v80_v20 }
  0x92   :  { %v88_v22 = vld [vmem:[#allocation2] sm:$0xff] }
  0x93   :  { %v96_v23 = vadd.f32 %v125_v21, %v88_v22  ;;  %v89_v24 = vld [vmem:[#allocation2 + $0x8] sm:$0xff] }
  0x94   :  { %v97_v25 = vadd.f32 %v125_v21, %v89_v24 }
  0x95   :  { %100 = vst.msk [vmem:[%s205_s3] sm:$0xff] %vm18_vm0, %v96_v23 }
  0x96   :  { %101 = vst.msk [vmem:[%s205_s3 + $0x8] sm:$0xff] %vm18_vm0, %v97_v25  ;;  %v90_v26 = vld [vmem:[#allocation2 + $0x10] sm:$0xff] }
  0x97   :  { %v98_v27 = vadd.f32 %v125_v21, %v90_v26  ;;  %v91_v28 = vld [vmem:[#allocation2 + $0x18] sm:$0xff] }
  0x98   :  { %v99_v29 = vadd.f32 %v125_v21, %v91_v28 }
  0x99   :  { %102 = vst.msk [vmem:[%s205_s3 + $0x10] sm:$0xff] %vm18_vm0, %v98_v27 }
  0x9a   :  { %103 = vst.msk [vmem:[%s205_s3 + $0x18] sm:$0xff] %vm18_vm0, %v99_v29 }

// kernel: _lambda_.14
= control target key start
LH: loop header
LB: loop body
LE: loop exit
PB: predicated region body
PF: predicated region fallthrough
CT: control target
= control target key end

     0   :  { %vm27_vm0 = vcmask 261120   ;;  %v267_v2 = vmov 0.0   ;;  %v268_v42 = vmov 32.0   ;;  %s400_s1 = inlined_call_operand.vmem [shape: f32[32,32], index: 1, kind: input, shape index: {}]   ;;  %s401_s0 = inlined_call_operand.vmem [shape: f32[32,32], index: 0, kind: input, shape index: {}]   ;;  %s402_s2 = inlined_call_operand.vmem [shape: f32[1,32], index: 2, kind: input, shape index: {}]   ;;  %s403_s3 = inlined_call_operand.vmem [shape: f32[32,32], index: 3, kind: input, shape index: {}]   ;;  %s404_s4 = inlined_call_operand.vmem [shape: f32[1,32], index: 4, kind: input, shape index: {}]   ;;  %s405_s5 = inlined_call_operand.vmem [shape: f32[1,32], index: 5, kind: input, shape index: {}]   ;;  %s406_s6 = inlined_call_operand.vmem [shape: f32[32,32], index: 6, kind: output, shape index: {}]  }
   0x1   :  { %v43_v0 = vld [vmem:[%s400_s1 + $0x18] sm:$0xff]  ;;  %v42_v1 = vld [vmem:[%s400_s1 + $0x10] sm:$0xff]  ;;  %28 = vst.msk [vmem:[#allocation2] sm:$0xff] %vm27_vm0, %v267_v2  ;;  %v41_v3 = vld [vmem:[%s400_s1 + $0x8] sm:$0xff]  ;;  %257 = vrcp.f32 %v268_v42 }
   0x2   :  { %69 = vmatpush.msra.mxu0 %v43_v0  ;;  %241 = vmatpush.msra.mxu2 %v43_v0  ;;  %29 = vst.msk [vmem:[#allocation2 + $0x8] sm:$0xff] %vm27_vm0, %v267_v2  ;;  %v40_v4 = vld [vmem:[%s400_s1] sm:$0xff]  ;;  %v38_v6 = vld [vmem:[%s401_s0 + $0x10] sm:$0xff]  ;;  %v37_v7 = vld [vmem:[%s401_s0 + $0x8] sm:$0xff] }
   0x3   :  { %240 = vmatpush.msra.mxu1 %v43_v0  ;;  %242 = vmatpush.msra.mxu3 %v43_v0  ;;  %30 = vst.msk [vmem:[#allocation2 + $0x10] sm:$0xff] %vm27_vm0, %v267_v2  ;;  %v36_v5 = vld [vmem:[%s401_s0] sm:$0xff]  ;;  %v39_v8 = vld [vmem:[%s401_s0 + $0x18] sm:$0xff]  ;;  %v110_v28 = vld [vmem:[%s403_s3 + $0x8] sm:$0xff] }
   0x4   :  { %70 = vmatpush.msra.mxu0 %v42_v1  ;;  %244 = vmatpush.msra.mxu2 %v42_v1  ;;  %31 = vst.msk [vmem:[#allocation2 + $0x18] sm:$0xff] %vm27_vm0, %v267_v2  ;;  %v254_v19 = vld [vmem:[%s402_s2] ss:$0 sm:$0xff]  ;;  %v111_v31 = vld [vmem:[%s403_s3 + $0x10] sm:$0xff]  ;;  %v112_v37 = vld [vmem:[%s403_s3 + $0x18] sm:$0xff] }
   0x5   :  { %243 = vmatpush.msra.mxu1 %v42_v1  ;;  %245 = vmatpush.msra.mxu3 %v42_v1  ;;  %v109_v23 = vld [vmem:[%s403_s3] sm:$0xff] }
   0x6   :  { %71 = vmatpush.msra.mxu0 %v41_v3  ;;  %247 = vmatpush.msra.mxu2 %v41_v3 }
   0x7   :  { %246 = vmatpush.msra.mxu1 %v41_v3  ;;  %248 = vmatpush.msra.mxu3 %v41_v3  ;;  %v258_v43 = vpop.eup %257 }
   0x8   :  { %72 = vmatpush.msra.mxu0 %v40_v4  ;;  %250 = vmatpush.msra.mxu2 %v40_v4  ;;  %v32_v9 = vld [vmem:[#allocation2] sm:$0xff]  ;;  %v130_v44 = vmul.f32 32.0, %v258_v43  ;;  %vm134_vm1 = vweird.f32 %v258_v43 }
   0x9   :  { %236 = vmatmul.msk.f32.vlgmr.msra.gmra.mxu0 %vm27_vm0, %v36_v5  ;;  %238 = vmatmul.msk.f32.vlgmr.msra.gmra.mxu2 %vm27_vm0, %v38_v6  ;;  %v33_v11 = vld [vmem:[#allocation2 + $0x8] sm:$0xff] }
   0xa   :  { %249 = vmatpush.msra.mxu1 %v40_v4  ;;  %251 = vmatpush.msra.mxu3 %v40_v4  ;;  %v34_v15 = vld [vmem:[#allocation2 + $0x10] sm:$0xff]  ;;  %v131_v45 = vsub.f32 1.0, %v130_v44 }
   0xb   :  { %237 = vmatmul.msk.f32.vlgmr.msra.gmra.mxu1 %vm27_vm0, %v37_v7  ;;  %239 = vmatmul.msk.f32.vlgmr.msra.gmra.mxu3 %vm27_vm0, %v39_v8  ;;  %v35_v17 = vld [vmem:[#allocation2 + $0x18] sm:$0xff] }
   0xc   :  { %v132_v46 = vmul.f32 %v258_v43, %v131_v45 }
   0xe   :  { %v133_v47 = vadd.f32 %v258_v43, %v132_v46 }
  0x10   :  { %v135_v48 = vsel %vm134_vm1, %v258_v43, %v133_v47 }
  0x86   :  { %v74_v10 = vpop.f32.mrf.mxu0 }
  0x87   :  { %v86_v12 = vadd.f32 %v74_v10, %v32_v9 }
  0x88   :  { %v77_v13 = vpop.f32.mrf.mxu1 }
  0x89   :  { %90 = vst.msk [vmem:[#allocation2] sm:$0xff] %vm27_vm0, %v86_v12  ;;  %v87_v14 = vadd.f32 %v77_v13, %v33_v11 }
  0x8b   :  { %91 = vst.msk [vmem:[#allocation2 + $0x8] sm:$0xff] %vm27_vm0, %v87_v14 }
  0x8c   :  { %v80_v16 = vpop.f32.mrf.mxu2 }
  0x8d   :  { %v88_v18 = vadd.f32 %v80_v16, %v34_v15 }
  0x8e   :  { %v83_v20 = vpop.f32.mrf.mxu3 }
  0x8f   :  { %92 = vst.msk [vmem:[#allocation2 + $0x10] sm:$0xff] %vm27_vm0, %v88_v18  ;;  %v89_v21 = vadd.f32 %v83_v20, %v35_v17 }
  0x90   :  { %v97_v22 = vld [vmem:[#allocation2] sm:$0xff] }
  0x91   :  { %93 = vst.msk [vmem:[#allocation2 + $0x18] sm:$0xff] %vm27_vm0, %v89_v21  ;;  %v105_v24 = vadd.f32 %v254_v19, %v97_v22 }
  0x92   :  { %v98_v25 = vld [vmem:[#allocation2 + $0x8] sm:$0xff] }
  0x93   :  { %v113_v26 = vadd.f32 %v109_v23, %v105_v24  ;;  %v106_v27 = vadd.f32 %v254_v19, %v98_v25 }
  0x95   :  { %v117_v29 = vsel %vm27_vm0, %v113_v26, 0.0  ;;  %v114_v33 = vadd.f32 %v110_v28, %v106_v27  ;;  %v255_v28 = vld [vmem:[%s404_s4] ss:$0 sm:$0xff] }
  0x96   :  { %118 = vadd.xlane.f32.xlu0 %v117_v29  ;;  %v99_v30 = vld [vmem:[#allocation2 + $0x10] sm:$0xff] }
  0x97   :  { %v107_v32 = vadd.f32 %v254_v19, %v99_v30  ;;  %v120_v39 = vsel %vm27_vm0, %v114_v33, 0.0 }
  0x98   :  { %v100_v34 = vld [vmem:[#allocation2 + $0x18] sm:$0xff] }
  0x99   :  { %v115_v35 = vadd.f32 %v111_v31, %v107_v32  ;;  %v108_v36 = vadd.f32 %v254_v19, %v100_v34  ;;  %v256_v32 = vld [vmem:[%s405_s5] ss:$0 sm:$0xff] }
  0x9b   :  { %v123_v38 = vsel %vm27_vm0, %v115_v35, 0.0  ;;  %v116_v40 = vadd.f32 %v112_v37, %v108_v36 }
  0x9c   :  { %124 = vadd.xlane.f32.xlu1 %v123_v38 }
  0x9d   :  { %v126_v41 = vsel %vm27_vm0, %v116_v40, 0.0 }
  0x9e   :  { %121 = vadd.xlane.f32.xlu0 %v120_v39 }
  0xa4   :  { %127 = vadd.xlane.f32.xlu1 %v126_v41 }
 0x109   :  { %v119_v49 = vpop.xlane.xlu0 %118 }
 0x10a   :  { %v136_v50 = vmul.f32 %v135_v48, %v119_v49 }
 0x10c   :  { %v140_v51 = vsub.f32 %v113_v26, %v136_v50 }
 0x10e   :  { %v144_v52 = vmul.f32 %v140_v51, %v140_v51 }
 0x10f   :  { %v125_v53 = vpop.xlane.xlu1 %124 }
 0x110   :  { %v138_v54 = vmul.f32 %v135_v48, %v125_v53  ;;  %v148_v55 = vsel %vm27_vm0, %v144_v52, 0.0 }
 0x111   :  { %149 = vadd.xlane.f32.xlu2 %v148_v55  ;;  %v122_v56 = vpop.xlane.xlu0 %121 }
 0x112   :  { %v360_v57 = vsub.f32 %v115_v35, %v138_v54  ;;  %v137_v58 = vmul.f32 %v135_v48, %v122_v56 }
 0x114   :  { %v362_v59 = vsub.f32 %v114_v33, %v137_v58  ;;  %v146_v60 = vmul.f32 %v360_v57, %v360_v57 }
 0x116   :  { %v154_v61 = vsel %vm27_vm0, %v146_v60, 0.0  ;;  %v145_v62 = vmul.f32 %v362_v59, %v362_v59 }
 0x117   :  { %v128_v63 = vpop.xlane.xlu1 %127  ;;  %155 = vadd.xlane.f32.xlu0 %v154_v61 }
 0x118   :  { %v139_v0 = vmul.f32 %v135_v48, %v128_v63  ;;  %v151_v1 = vsel %vm27_vm0, %v145_v62, 0.0 }
 0x119   :  { %152 = vadd.xlane.f32.xlu2 %v151_v1 }
 0x11a   :  { %v370_v2 = vsub.f32 %v116_v40, %v139_v0 }
 0x11c   :  { %v147_v3 = vmul.f32 %v370_v2, %v370_v2 }
 0x11e   :  { %v157_v4 = vsel %vm27_vm0, %v147_v3, 0.0 }
 0x11f   :  { %158 = vadd.xlane.f32.xlu1 %v157_v4 }
 0x184   :  { %v150_v5 = vpop.xlane.xlu2 %149 }
 0x185   :  { %v160_v6 = vmul.f32 %v150_v5, %v135_v48 }
 0x187   :  { %v164_v7 = vadd.f32 1e-05, %v160_v6 }
 0x189   :  { %259 = vrsqrt.f32 %v164_v7  ;;  %vm174_vm3 = vweird.f32 %v164_v7 }
 0x18a   :  { %v156_v8 = vpop.xlane.xlu0 %155 }
 0x18b   :  { %v162_v9 = vmul.f32 %v156_v8, %v135_v48 }
 0x18c   :  { %v153_v10 = vpop.xlane.xlu2 %152 }
 0x18d   :  { %v166_v11 = vadd.f32 1e-05, %v162_v9  ;;  %v161_v12 = vmul.f32 %v153_v10, %v135_v48 }
 0x18f   :  { %v260_v13 = vpop.eup %259  ;;  %261 = vrsqrt.f32 %v166_v11  ;;  %v165_v14 = vadd.f32 1e-05, %v161_v12  ;;  %vm194_vm6 = vweird.f32 %v166_v11 }
 0x190   :  { %v169_v15 = vmul.f32 %v260_v13, %v164_v7  ;;  %vm175_vm2 = vweird.f32 %v260_v13 }
 0x191   :  { %263 = vrsqrt.f32 %v165_v14  ;;  %vm176_vm4 = vmor %vm174_vm3, %vm175_vm2  ;;  %vm184_vm9 = vweird.f32 %v165_v14 }
 0x192   :  { %v170_v16 = vmul.f32 %v260_v13, %v169_v15  ;;  %v159_v17 = vpop.xlane.xlu1 %158 }
 0x193   :  { %v163_v18 = vmul.f32 %v159_v17, %v135_v48 }
 0x194   :  { %v171_v19 = vmul.f32 0.5, %v170_v16 }
 0x195   :  { %v262_v20 = vpop.eup %261  ;;  %v167_v21 = vadd.f32 1e-05, %v163_v18 }
 0x196   :  { %v172_v22 = vsub.f32 1.5, %v171_v19  ;;  %v189_v23 = vmul.f32 %v262_v20, %v166_v11  ;;  %vm195_vm5 = vweird.f32 %v262_v20 }
 0x197   :  { %v264_v24 = vpop.eup %263  ;;  %265 = vrsqrt.f32 %v167_v21  ;;  %vm196_vm8 = vmor %vm194_vm6, %vm195_vm5  ;;  %vm204_vm12 = vweird.f32 %v167_v21 }
 0x198   :  { %v173_v25 = vmul.f32 %v260_v13, %v172_v22  ;;  %v190_v26 = vmul.f32 %v262_v20, %v189_v23  ;;  %v179_v27 = vmul.f32 %v264_v24, %v165_v14  ;;  %vm185_vm7 = vweird.f32 %v264_v24 }
 0x199   :  { %vm186_vm10 = vmor %vm184_vm9, %vm185_vm7 }
 0x19a   :  { %v177_v29 = vsel %vm176_vm4, %v260_v13, %v173_v25  ;;  %v191_v30 = vmul.f32 0.5, %v190_v26  ;;  %v180_v31 = vmul.f32 %v264_v24, %v179_v27 }
 0x19b   :  { %v208_v33 = vmul.f32 %v177_v29, %v140_v51 }
 0x19c   :  { %v192_v34 = vsub.f32 1.5, %v191_v30  ;;  %v181_v35 = vmul.f32 0.5, %v180_v31 }
 0x19d   :  { %v266_v36 = vpop.eup %265  ;;  %v216_v37 = vmul.f32 %v255_v28, %v208_v33 }
 0x19e   :  { %v193_v38 = vmul.f32 %v262_v20, %v192_v34  ;;  %v182_v39 = vsub.f32 1.5, %v181_v35  ;;  %v199_v40 = vmul.f32 %v266_v36, %v167_v21  ;;  %vm205_vm11 = vweird.f32 %v266_v36 }
 0x19f   :  { %v224_v41 = vadd.f32 %v256_v32, %v216_v37  ;;  %vm206_vm13 = vmor %vm204_vm12, %vm205_vm11 }
 0x1a0   :  { %v197_v42 = vsel %vm196_vm8, %v262_v20, %v193_v38  ;;  %v183_v43 = vmul.f32 %v264_v24, %v182_v39  ;;  %v200_v44 = vmul.f32 %v266_v36, %v199_v40 }
 0x1a1   :  { %228 = vst.msk [vmem:[%s406_s6] sm:$0xff] %vm27_vm0, %v224_v41  ;;  %v210_v45 = vmul.f32 %v197_v42, %v360_v57 }
 0x1a2   :  { %v187_v46 = vsel %vm186_vm10, %v264_v24, %v183_v43  ;;  %v201_v47 = vmul.f32 0.5, %v200_v44 }
 0x1a3   :  { %v218_v48 = vmul.f32 %v255_v28, %v210_v45  ;;  %v209_v49 = vmul.f32 %v187_v46, %v362_v59 }
 0x1a4   :  { %v202_v50 = vsub.f32 1.5, %v201_v47 }
 0x1a5   :  { %v226_v51 = vadd.f32 %v256_v32, %v218_v48  ;;  %v217_v52 = vmul.f32 %v255_v28, %v209_v49 }
 0x1a6   :  { %v203_v53 = vmul.f32 %v266_v36, %v202_v50 }
 0x1a7   :  { %230 = vst.msk [vmem:[%s406_s6 + $0x10] sm:$0xff] %vm27_vm0, %v226_v51  ;;  %v225_v54 = vadd.f32 %v256_v32, %v217_v52 }
 0x1a8   :  { %v207_v55 = vsel %vm206_vm13, %v266_v36, %v203_v53 }
 0x1a9   :  { %229 = vst.msk [vmem:[%s406_s6 + $0x8] sm:$0xff] %vm27_vm0, %v225_v54  ;;  %v211_v56 = vmul.f32 %v207_v55, %v370_v2 }
 0x1ab   :  { %v219_v57 = vmul.f32 %v255_v28, %v211_v56 }
 0x1ad   :  { %v227_v58 = vadd.f32 %v256_v32, %v219_v57 }
 0x1af   :  { %231 = vst.msk [vmem:[%s406_s6 + $0x18] sm:$0xff] %vm27_vm0, %v227_v58 }

// kernel: _lambda_.13
= control target key start
LH: loop header
LB: loop body
LE: loop exit
PB: predicated region body
PF: predicated region fallthrough
CT: control target
= control target key end

     0   :  { %s1003_s15 = smov 0   ;;  %s1209_s0 = inlined_call_operand.vmem [shape: f32[2,16,64], index: 0, kind: input, shape index: {}]   ;;  %s1210_s1 = inlined_call_operand.vmem [shape: f32[2,16,32], index: 1, kind: input, shape index: {}]   ;;  %s1211_s2 = inlined_call_operand.vmem [shape: f32[16,16], index: 2, kind: input, shape index: {}]   ;;  %s1212_s3 = inlined_call_operand.vmem [shape: f32[2,1,16], index: 3, kind: input, shape index: {}]   ;;  %s1213_s4 = inlined_call_operand.vmem [shape: f32[2,16,32], index: 4, kind: output, shape index: {}]  }
   0x1 LB: > { %s854_s16 = sadd.s32 4294967295, %s966_s15   ;;  %p858_p0 = scmp.ge.s32.totalorder %s966_s15, 1  ;;  %s966_s15 = sphi %s1003_s15, %s14_s15  }
   0x2   : > { %p180_p1 = scmp.lt.s32.totalorder %s966_s15, 3 }
   0x4   : > { %p181_p2 = pnand %p858_p0, %p180_p1 }
   0x5   : > { %p214_p3 = scmp.lt.s32.totalorder (!%p181_p2), %s854_s16, 1  ;;  %s968_s21 = smov (!%p181_p2), 96  }
   0x6   : > { %184 = sbr.rel (%p181_p2) target bundleno = 1220 (0x4c4), region = 36  ;;  %s969_s25 = smov (!%p181_p2), 88  }
   0x7   : > { %s970_s26 = smov (!%p181_p2), 120   ;;  %s971_s27 = smov (!%p181_p2), 72  }
   0x8   : > { %s972_s6 = smov (!%p181_p2), 80   ;;  %s973_s7 = smov (!%p181_p2), 112  }
   0x9   : > { %s974_s8 = smov (!%p181_p2), 104   ;;  %s975_s12 = smov (!%p181_p2), 8  }
   0xa   : > { %s976_s13 = smov (!%p181_p2), 16   ;;  %s977_s14 = smov (!%p181_p2), 24  }
   0xb   : > { %s1219_s16 = smov (!%p214_p3, %s854_s16), 1  ;;  %vm250_vm0 = vcmask 64512   ;;  %v236_v5 = vld [vmem:[%s1211_s2] sm:$0xff]  ;;  %vm286_vm1 = vcmask 130048   ;;  %v237_v10 = vld [vmem:[%s1211_s2 + $0x8] sm:$0xff] }
   0xc   : > { %s1011_s17 = sshll.u32 %s1219_s16, 4  ;;  %s226_s24 = scalar_lea.vmem %s1212_s3, %s1219_s16 }
   0xd   : > { %s218_s20 = scalar_lea.vmem %s1209_s0, %s1011_s17  ;;  %v927_v4 = vld [vmem:[%s226_s24] ss:$0 sm:$0xff]  ;;  %s223_s11 = scalar_lea.vmem %s1210_s1, %s1011_s17 }
   0xe   : > { %v1017_v0 = vld [vmem:[%s218_s20 + $0x8] sm:$0xff]  ;;  %v1020_v1 = vld [vmem:[%s218_s20] sm:$0xff]  ;;  %v1042_v6 = vadd.f32 %v927_v4, %v236_v5  ;;  %v1049_v12 = vadd.f32 %v927_v4, %v237_v10  ;;  %s231_s19 = scalar_lea.vmem %s1213_s4, %s1011_s17 }
   0xf   : > { %248 = vrot.lane.b32.xlu0 %v1017_v0, %s968_s21  ;;  %370 = vrot.lane.b32.xlu2 %v1017_v0, %s969_s25  ;;  %v1077_v32 = vld [vmem:[%s223_s11 + $0x8] sm:$0xff]  ;;  %v1080_v33 = vld [vmem:[%s223_s11] sm:$0xff] }
  0x10   : > { %355 = vmatpush.msra.mxu1 %v1077_v32 }
  0x12   : > { %356 = vmatpush.msra.mxu1 %v1080_v33 }
  0x17   : > { %246 = vrot.lane.b32.xlu0 %v1020_v1, %s968_s21  ;;  %364 = vrot.lane.b32.xlu2 %v1020_v1, %s970_s26 }
  0x1f   : > { %366 = vrot.lane.b32.xlu2 %v1017_v0, %s970_s26 }
  0x27   : > { %624 = vrot.lane.b32.xlu2 %v1017_v0, %s971_s27 }
  0x69   : > { %v371_v17 = vpop.permute.xlu2 %370 }
  0x6a   : > { %871 = vmatpush.xpose.msk.msra.mxu2 %vm250_vm0, %v371_v17 }
  0x71   : > { %v365_v20 = vpop.permute.xlu2 %364 }
  0x79   : > { %v367_v24 = vpop.permute.xlu2 %366 }
  0x81   : > { %v249_v2 = vpop.permute.xlu0 %248  ;;  %v625_v28 = vpop.permute.xlu2 %624 }
  0x82   : > { %865 = vmatpush.xpose.msk.msra.mxu0 %vm250_vm0, %v249_v2 }
  0x89   : > { %v247_v3 = vpop.permute.xlu0 %246 }
  0x8a   : > { %866 = vmatpush.xpose.msk.msra.mxu0 %vm250_vm0, %v247_v3 }
  0x8d   : > { %867 = vmatmul.msk.f32.vlgmr.msra.gmra.mxu0 %vm250_vm0, %v1020_v1 }
  0x8e   : > { %883 = vmatpush.xpose.msk.msrb.mxu0 %vm250_vm0, %v625_v28 }
  0x95   : > { %868 = vmatmul.msk.f32.gmra.mxu0 %vm250_vm0, %v1017_v0 }
 0x10a   : > { %v276_v7 = vpop.f32.mrf.mxu0 }
 0x10b   : > { %v282_v8 = vmul.f32 0.35355338, %v276_v7 }
 0x10d   : > { %v284_v9 = vadd.f32 %v282_v8, %v1042_v6 }
 0x10f   : > { %v287_v11 = vsel %vm286_vm1, %v284_v9, -inf }
 0x110   : > { %288 = vmax.xlane.f32.xlu1 %v287_v11 }
 0x112   : > { %v279_v13 = vpop.f32.mrf.mxu0 }
 0x113   : > { %v283_v14 = vmul.f32 0.35355338, %v279_v13 }
 0x115   : > { %v285_v15 = vadd.f32 %v283_v14, %v1049_v12 }
 0x117   : > { %v290_v16 = vsel %vm286_vm1, %v285_v15, -inf }
 0x118   : > { %291 = vmax.xlane.f32.xlu1 %v290_v16 }
 0x131   : > { %368 = vrot.lane.b32.xlu1 %v1020_v1, %s969_s25 }
 0x139   : > { %498 = vrot.lane.b32.xlu1 %v1017_v0, %s972_s6 }
 0x141   : > { %496 = vrot.lane.b32.xlu1 %v1020_v1, %s972_s6 }
 0x149   : > { %492 = vrot.lane.b32.xlu1 %v1020_v1, %s973_s7 }
 0x151   : > { %620 = vrot.lane.b32.xlu1 %v1017_v0, %s974_s8 }
 0x183   : > { %v289_v18 = vpop.xlane.xlu1 %288 }
 0x184   : > { %v293_v19 = vsub.f32 %v284_v9, %v289_v18 }
 0x186   : > { %v295_v21 = vmul.f32 1.442695, %v293_v19 }
 0x188   : > { %928 = vpow2.f32 %v295_v21 }
 0x18b   : > { %v292_v22 = vpop.xlane.xlu1 %291 }
 0x18c   : > { %v294_v23 = vsub.f32 %v285_v15, %v292_v22 }
 0x18e   : > { %v929_v25 = vpop.eup %928  ;;  %v297_v26 = vmul.f32 1.442695, %v294_v23 }
 0x18f   : > { %v299_v27 = vsel %vm286_vm1, %v929_v25, 0.0 }
 0x190   : > { %930 = vpow2.f32 %v297_v26  ;;  %300 = vadd.xlane.f32.xlu2 %v299_v27 }
 0x196   : > { %v931_v29 = vpop.eup %930 }
 0x197   : > { %v302_v30 = vsel %vm286_vm1, %v931_v29, 0.0 }
 0x198   : > { %303 = vadd.xlane.f32.xlu0 %v302_v30 }
 0x1a3   : > { %v369_v31 = vpop.permute.xlu1 %368 }
 0x1a4   : > { %872 = vmatpush.xpose.msk.msra.mxu2 %vm250_vm0, %v369_v31 }
 0x1a7   : > { %873 = vmatmul.msk.f32.vlgmr.msra.gmra.mxu2 %vm250_vm0, %v365_v20 }
 0x1a8   : > { %622 = vrot.lane.b32.xlu2 %v1020_v1, %s971_s27 }
 0x1ab   : > { %v499_v34 = vpop.permute.xlu1 %498 }
 0x1ac   : > { %618 = vrot.lane.b32.xlu0 %v1020_v1, %s974_s8  ;;  %877 = vmatpush.xpose.msk.msrb.mxu1 %vm250_vm0, %v499_v34 }
 0x1af   : > { %874 = vmatmul.msk.f32.gmra.mxu2 %vm250_vm0, %v367_v24 }
 0x1b0   : > { %494 = vrot.lane.b32.xlu2 %v1017_v0, %s973_s7 }
 0x1b3   : > { %v497_v35 = vpop.permute.xlu1 %496 }
 0x1b4   : > { %878 = vmatpush.xpose.msk.msrb.mxu1 %vm250_vm0, %v497_v35 }
 0x1bb   : > { %v493_v58 = vpop.permute.xlu1 %492 }
 0x1c3   : > { %v621_v63 = vpop.permute.xlu1 %620 }
 0x203   : > { %v301_v36 = vpop.xlane.xlu2 %300 }
 0x204   : > { %932 = vrcp.f32 %v301_v36  ;;  %v316_v42 = vand.u32 2147483648, %v301_v36  ;;  %v314_v44 = vand.u32 2147483647, %v301_v36  ;;  %vm310_vm3 = vweird.f32 %v301_v36 }
 0x206   : > { %v317_v47 = vor.u32 1.1754944e-38, %v316_v42  ;;  %vm315_vm5 = vcmp.eq.f32.partialorder %v314_v44, 8.507059e+37 }
 0x20a   : > { %v933_v37 = vpop.eup %932 }
 0x20b   : > { %v306_v38 = vmul.f32 %v933_v37, %v301_v36  ;;  %v304_v39 = vpop.xlane.xlu0 %303  ;;  %v623_v40 = vpop.permute.xlu2 %622  ;;  %vm311_vm2 = vweird.f32 %v933_v37 }
 0x20c   : > { %934 = vrcp.f32 %v304_v39  ;;  %884 = vmatpush.xpose.msk.msrb.mxu0 %vm250_vm0, %v623_v40  ;;  %vm312_vm4 = vmor %vm310_vm3, %vm311_vm2  ;;  %v330_v53 = vand.u32 2147483648, %v304_v39  ;;  %v328_v55 = vand.u32 2147483647, %v304_v39  ;;  %vm324_vm7 = vweird.f32 %v304_v39 }
 0x20d   : > { %v307_v41 = vsub.f32 1.0, %v306_v38 }
 0x20e   : > { %v331_v57 = vor.u32 1.1754944e-38, %v330_v53  ;;  %vm329_vm9 = vcmp.eq.f32.partialorder %v328_v55, 8.507059e+37 }
 0x20f   : > { %v308_v43 = vmul.f32 %v933_v37, %v307_v41 }
 0x211   : > { %v309_v45 = vadd.f32 %v933_v37, %v308_v43 }
 0x212   : > { %v935_v46 = vpop.eup %934 }
 0x213   : > { %v320_v48 = vmul.f32 %v935_v46, %v304_v39  ;;  %v313_v49 = vsel %vm312_vm4, %v933_v37, %v309_v45  ;;  %vm325_vm6 = vweird.f32 %v935_v46  ;;  %v495_v2 = vpop.permute.xlu2 %494 }
 0x214   : > { %v318_v50 = vsel %vm315_vm5, %v317_v47, %v313_v49  ;;  %vm326_vm8 = vmor %vm324_vm7, %vm325_vm6 }
 0x215   : > { %v321_v51 = vsub.f32 1.0, %v320_v48  ;;  %v333_v52 = vmul.f32 %v929_v25, %v318_v50 }
 0x217   : > { %v322_v54 = vmul.f32 %v935_v46, %v321_v51  ;;  %869 = vmatmul.msk.f32.vlgmr.msra.gmra.mxu1 %vm286_vm1, %v333_v52 }
 0x219   : > { %v323_v56 = vadd.f32 %v935_v46, %v322_v54 }
 0x21b   : > { %v327_v59 = vsel %vm326_vm8, %v935_v46, %v323_v56 }
 0x21c   : > { %v332_v60 = vsel %vm329_vm9, %v331_v57, %v327_v59 }
 0x21d   : > { %v334_v61 = vmul.f32 %v931_v29, %v332_v60 }
 0x21e   : > { %v619_v62 = vpop.permute.xlu0 %618 }
 0x21f   : > { %870 = vmatmul.msk.f32.gmra.mxu1 %vm286_vm1, %v334_v61  ;;  %885 = vmatmul.msk.f32.vlgmr.msrb.gmra.mxu0 %vm250_vm0, %v619_v62 }
 0x227   : > { %879 = vmatmul.msk.f32.vlgmr.msrb.gmra.mxu1 %vm250_vm0, %v493_v58  ;;  %886 = vmatmul.msk.f32.gmra.mxu0 %vm250_vm0, %v621_v63 }
 0x22a   : > { %v397_v0 = vpop.f32.mrf.mxu2 }
 0x22b   : > { %v403_v1 = vmul.f32 0.35355338, %v397_v0 }
 0x22d   : > { %v405_v3 = vadd.f32 %v403_v1, %v1042_v6 }
 0x22f   : > { %880 = vmatmul.msk.f32.gmra.mxu1 %vm250_vm0, %v495_v2  ;;  %v407_v4 = vsel %vm286_vm1, %v405_v3, -inf }
 0x230   : > { %408 = vmax.xlane.f32.xlu2 %v407_v4 }
 0x232   : > { %v400_v5 = vpop.f32.mrf.mxu2 }
 0x233   : > { %v404_v7 = vmul.f32 0.35355338, %v400_v5 }
 0x235   : > { %v406_v8 = vadd.f32 %v404_v7, %v1049_v12 }
 0x237   : > { %v410_v9 = vsel %vm286_vm1, %v406_v8, -inf }
 0x238   : > { %411 = vmax.xlane.f32.xlu1 %v410_v9 }
 0x294   : > { %v1096_v10 = vpop.f32.mrf.mxu1 }
 0x29c   : > { %v1098_v11 = vpop.f32.mrf.mxu1  ;;  %v651_v13 = vpop.f32.mrf.mxu0 }
 0x29d   : > { %v657_v14 = vmul.f32 0.35355338, %v651_v13 }
 0x29f   : > { %v659_v15 = vadd.f32 %v657_v14, %v1042_v6 }
 0x2a1   : > { %v661_v16 = vsel %vm286_vm1, %v659_v15, -inf }
 0x2a2   : > { %662 = vmax.xlane.f32.xlu2 %v661_v16 }
 0x2a3   : > { %v409_v17 = vpop.xlane.xlu2 %408 }
 0x2a4   : > { %v413_v18 = vsub.f32 %v405_v3, %v409_v17  ;;  %v525_v19 = vpop.f32.mrf.mxu1  ;;  %v654_v20 = vpop.f32.mrf.mxu0 }
 0x2a5   : > { %v531_v21 = vmul.f32 0.35355338, %v525_v19  ;;  %v658_v24 = vmul.f32 0.35355338, %v654_v20 }
 0x2a6   : > { %v415_v22 = vmul.f32 1.442695, %v413_v18 }
 0x2a7   : > { %v533_v23 = vadd.f32 %v531_v21, %v1042_v6  ;;  %v660_v27 = vadd.f32 %v658_v24, %v1049_v12 }
 0x2a8   : > { %936 = vpow2.f32 %v415_v22 }
 0x2a9   : > { %v535_v25 = vsel %vm286_vm1, %v533_v23, -inf  ;;  %v664_v6 = vsel %vm286_vm1, %v660_v27, -inf }
 0x2aa   : > { %536 = vmax.xlane.f32.xlu0 %v535_v25 }
 0x2ab   : > { %v412_v26 = vpop.xlane.xlu1 %411 }
 0x2ac   : > { %v414_v28 = vsub.f32 %v406_v8, %v412_v26  ;;  %v528_v29 = vpop.f32.mrf.mxu1 }
 0x2ad   : > { %v532_v30 = vmul.f32 0.35355338, %v528_v29 }
 0x2ae   : > { %v1105_v31 = vpop.eup %936  ;;  %v417_v34 = vmul.f32 1.442695, %v414_v28 }
 0x2af   : > { %v534_v35 = vadd.f32 %v532_v30, %v1049_v12  ;;  %v419_v36 = vsel %vm286_vm1, %v1105_v31, 0.0  ;;  %v1118_v12 = vpack.i.bf16 %v1080_v33, %v1077_v32 }
 0x2b0   : > { %938 = vpow2.f32 %v417_v34  ;;  %420 = vadd.xlane.f32.xlu2 %v419_v36 }
 0x2b1   : > { %v538_v37 = vsel %vm286_vm1, %v534_v35, -inf }
 0x2b2   : > { %539 = vmax.xlane.f32.xlu1 %v538_v37  ;;  %665 = vmax.xlane.f32.xlu0 %v664_v6 }
 0x2b6   : > { %v1112_v38 = vpop.eup %938 }
 0x2b7   : > { %v422_v39 = vsel %vm286_vm1, %v1112_v38, 0.0 }
 0x2ba   : > { %423 = vadd.xlane.f32.xlu1 %v422_v39 }
 0x2c8   : > { %913 = vrot.lane.b32.xlu2 %v1118_v12, %s970_s26 }
 0x315   : > { %v663_v40 = vpop.xlane.xlu2 %662 }
 0x316   : > { %v667_v41 = vsub.f32 %v659_v15, %v663_v40 }
 0x318   : > { %v669_v42 = vmul.f32 1.442695, %v667_v41 }
 0x31a   : > { %940 = vpow2.f32 %v669_v42 }
 0x31d   : > { %v537_v43 = vpop.xlane.xlu0 %536 }
 0x31e   : > { %v541_v44 = vsub.f32 %v533_v23, %v537_v43 }
 0x320   : > { %v1122_v45 = vpop.eup %940  ;;  %v543_v46 = vmul.f32 1.442695, %v541_v44 }
 0x321   : > { %v673_v47 = vsel %vm286_vm1, %v1122_v45, 0.0 }
 0x322   : > { %942 = vpow2.f32 %v543_v46  ;;  %674 = vadd.xlane.f32.xlu1 %v673_v47 }
 0x323   : > { %v421_v48 = vpop.xlane.xlu2 %420 }
 0x324   : > { %944 = vrcp.f32 %v421_v48  ;;  %v436_v62 = vand.u32 2147483648, %v421_v48  ;;  %v434_v0 = vand.u32 2147483647, %v421_v48  ;;  %vm430_vm11 = vweird.f32 %v421_v48 }
 0x325   : > { %v666_v32 = vpop.xlane.xlu0 %665  ;;  %v540_v33 = vpop.xlane.xlu1 %539 }
 0x326   : > { %v668_v49 = vsub.f32 %v660_v27, %v666_v32  ;;  %v542_v50 = vsub.f32 %v534_v35, %v540_v33  ;;  %v437_v5 = vor.u32 1.1754944e-38, %v436_v62  ;;  %vm435_vm13 = vcmp.eq.f32.partialorder %v434_v0, 8.507059e+37 }
 0x328   : > { %v1126_v51 = vpop.eup %942  ;;  %v671_v52 = vmul.f32 1.442695, %v668_v49  ;;  %v545_v53 = vmul.f32 1.442695, %v542_v50 }
 0x329   : > { %v547_v54 = vsel %vm286_vm1, %v1126_v51, 0.0 }
 0x32a   : > { %v945_v55 = vpop.eup %944  ;;  %946 = vpow2.f32 %v671_v52  ;;  %548 = vadd.xlane.f32.xlu0 %v547_v54 }
 0x32b   : > { %v426_v56 = vmul.f32 %v945_v55, %v421_v48  ;;  %948 = vpow2.f32 %v545_v53  ;;  %v914_v57 = vpop.permute.xlu2 %913  ;;  %vm431_vm10 = vweird.f32 %v945_v55 }
 0x32c   : > { %v915_v58 = vunpack.i.l.bf16 %v914_v57  ;;  %v916_v59 = vunpack.i.h.bf16 %v914_v57  ;;  %vm432_vm12 = vmor %vm430_vm11, %vm431_vm10 }
 0x32d   : > { %v427_v60 = vsub.f32 1.0, %v426_v56  ;;  %v424_v61 = vpop.xlane.xlu1 %423 }
 0x32e   : > { %950 = vrcp.f32 %v424_v61  ;;  %483 = vmatpush.msra.mxu3 %v915_v58  ;;  %v450_v17 = vand.u32 2147483648, %v424_v61  ;;  %v448_v19 = vand.u32 2147483647, %v424_v61  ;;  %vm444_vm15 = vweird.f32 %v424_v61 }
 0x32f   : > { %v428_v63 = vmul.f32 %v945_v55, %v427_v60 }
 0x330   : > { %v1130_v1 = vpop.eup %946  ;;  %484 = vmatpush.msra.mxu3 %v916_v59  ;;  %v451_v21 = vor.u32 1.1754944e-38, %v450_v17  ;;  %vm449_vm3 = vcmp.eq.f32.partialorder %v448_v19, 8.507059e+37 }
 0x331   : > { %v1132_v2 = vpop.eup %948  ;;  %v676_v3 = vsel %vm286_vm1, %v1130_v1, 0.0  ;;  %v429_v4 = vadd.f32 %v945_v55, %v428_v63 }
 0x332   : > { %677 = vadd.xlane.f32.xlu1 %v676_v3  ;;  %v550_v7 = vsel %vm286_vm1, %v1132_v2, 0.0 }
 0x333   : > { %551 = vadd.xlane.f32.xlu0 %v550_v7  ;;  %v433_v8 = vsel %vm432_vm12, %v945_v55, %v429_v4 }
 0x334   : > { %v951_v9 = vpop.eup %950  ;;  %v438_v13 = vsel %vm435_vm13, %v437_v5, %v433_v8 }
 0x335   : > { %v440_v14 = vmul.f32 %v951_v9, %v424_v61  ;;  %v453_v15 = vmul.f32 %v1105_v31, %v438_v13  ;;  %vm445_vm14 = vweird.f32 %v951_v9 }
 0x336   : > { %vm446_vm2 = vmor %vm444_vm15, %vm445_vm14 }
 0x337   : > { %v441_v16 = vsub.f32 1.0, %v440_v14  ;;  %875 = vmatmul.msk.f32.vlgmr.msra.gmra.mxu3 %vm286_vm1, %v453_v15 }
 0x339   : > { %v442_v18 = vmul.f32 %v951_v9, %v441_v16 }
 0x33b   : > { %v443_v20 = vadd.f32 %v951_v9, %v442_v18 }
 0x33d   : > { %v447_v22 = vsel %vm446_vm2, %v951_v9, %v443_v20 }
 0x33e   : > { %v452_v23 = vsel %vm449_vm3, %v451_v21, %v447_v22 }
 0x33f   : > { %v454_v24 = vmul.f32 %v1112_v38, %v452_v23 }
 0x341   : > { %876 = vmatmul.msk.f32.gmra.mxu3 %vm286_vm1, %v454_v24 }
 0x347   : > { %918 = vrot.lane.b32.xlu0 %v1118_v12, %s973_s7 }
 0x34b   : > { %923 = vrot.lane.b32.xlu1 %v1118_v12, %s974_s8 }
 0x395   : > { %v675_v26 = vpop.xlane.xlu1 %674 }
 0x396   : > { %v690_v49 = vand.u32 2147483648, %v675_v26  ;;  %vm684_vm8 = vweird.f32 %v675_v26  ;;  %v688_v52 = vand.u32 2147483647, %v675_v26 }
 0x398   : > { %v691_v62 = vor.u32 1.1754944e-38, %v690_v49  ;;  %vm689_vm12 = vcmp.eq.f32.partialorder %v688_v52, 8.507059e+37 }
 0x39d   : > { %v549_v25 = vpop.xlane.xlu0 %548 }
 0x39e   : > { %952 = vrcp.f32 %v549_v25  ;;  %v564_v43 = vand.u32 2147483648, %v549_v25  ;;  %vm558_vm5 = vweird.f32 %v549_v25  ;;  %v562_v44 = vand.u32 2147483647, %v549_v25 }
 0x39f   : > { %954 = vrcp.f32 %v675_v26 }
 0x3a0   : > { %v565_v50 = vor.u32 1.1754944e-38, %v564_v43  ;;  %vm563_vm9 = vcmp.eq.f32.partialorder %v562_v44, 8.507059e+37 }
 0x3a4   : > { %v953_v27 = vpop.eup %952 }
 0x3a5   : > { %v955_v29 = vpop.eup %954  ;;  %v554_v30 = vmul.f32 %v953_v27, %v549_v25  ;;  %v1149_v31 = vpop.xlane.xlu1 %677  ;;  %vm559_vm4 = vweird.f32 %v953_v27 }
 0x3a6   : > { %v1146_v28 = vpop.xlane.xlu0 %551  ;;  %v680_v34 = vmul.f32 %v955_v29, %v675_v26  ;;  %vm685_vm6 = vweird.f32 %v955_v29  ;;  %vm1160_vm7 = vmor %vm558_vm5, %vm559_vm4  ;;  %v704_v14 = vand.u32 2147483648, %v1149_v31  ;;  %vm698_vm2 = vweird.f32 %v1149_v31 }
 0x3a7   : > { %956 = vrcp.f32 %v1146_v28  ;;  %v555_v35 = vsub.f32 1.0, %v554_v30  ;;  %vm1167_vm10 = vmor %vm684_vm8, %vm685_vm6  ;;  %v578_v63 = vand.u32 2147483648, %v1146_v28  ;;  %vm572_vm13 = vweird.f32 %v1146_v28 }
 0x3a8   : > { %958 = vrcp.f32 %v1149_v31  ;;  %v681_v6 = vsub.f32 1.0, %v680_v34  ;;  %v576_v4 = vand.u32 2147483647, %v1146_v28  ;;  %v702_v16 = vand.u32 2147483647, %v1149_v31 }
 0x3a9   : > { %v556_v37 = vmul.f32 %v953_v27, %v555_v35  ;;  %v579_v13 = vor.u32 1.1754944e-38, %v578_v63  ;;  %v705_v19 = vor.u32 1.1754944e-38, %v704_v14  ;;  %vm772_vm6 = vcmask 195584  }
 0x3aa   : > { %v682_v12 = vmul.f32 %v955_v29, %v681_v6  ;;  %vm577_vm3 = vcmp.eq.f32.partialorder %v576_v4, 8.507059e+37  ;;  %vm703_vm5 = vcmp.eq.f32.partialorder %v702_v16, 8.507059e+37 }
 0x3ab   : > { %v557_v40 = vadd.f32 %v953_v27, %v556_v37 }
 0x3ac   : > { %v683_v47 = vadd.f32 %v955_v29, %v682_v12 }
 0x3ad   : > { %v1152_v36 = vpop.eup %956  ;;  %v561_v33 = vsel %vm1160_vm7, %v953_v27, %v557_v40  ;;  %vm775_vm7 = vcmask 261120  }
 0x3ae   : > { %v568_v38 = vmul.f32 %v1152_v36, %v1146_v28  ;;  %v1156_v39 = vpop.eup %958  ;;  %v566_v58 = vsel %vm563_vm9, %v565_v50, %v561_v33  ;;  %v687_v60 = vsel %vm1167_vm10, %v955_v29, %v683_v47  ;;  %vm573_vm11 = vweird.f32 %v1152_v36 }
 0x3af   : > { %v694_v42 = vmul.f32 %v1156_v39, %v1149_v31  ;;  %v581_v3 = vmul.f32 %v1126_v51, %v566_v58  ;;  %v692_v7 = vsel %vm689_vm12, %v691_v62, %v687_v60  ;;  %vm574_vm14 = vmor %vm572_vm13, %vm573_vm11  ;;  %vm699_vm15 = vweird.f32 %v1156_v39 }
 0x3b0   : > { %v569_v41 = vsub.f32 1.0, %v568_v38  ;;  %v707_v51 = vmul.f32 %v1122_v45, %v692_v7  ;;  %vm700_vm4 = vmor %vm698_vm2, %vm699_vm15 }
 0x3b1   : > { %v695_v32 = vsub.f32 1.0, %v694_v42 }
 0x3b2   : > { %v570_v48 = vmul.f32 %v1152_v36, %v569_v41 }
 0x3b3   : > { %v696_v59 = vmul.f32 %v1156_v39, %v695_v32 }
 0x3b4   : > { %v571_v61 = vadd.f32 %v1152_v36, %v570_v48 }
 0x3b5   : > { %v697_v9 = vadd.f32 %v1156_v39, %v696_v59 }
 0x3b6   : > { %v575_v8 = vsel %vm574_vm14, %v1152_v36, %v571_v61 }
 0x3b7   : > { %v580_v17 = vsel %vm577_vm3, %v579_v13, %v575_v8  ;;  %v701_v18 = vsel %vm700_vm4, %v1156_v39, %v697_v9 }
 0x3b8   : > { %v582_v21 = vmul.f32 %v1132_v2, %v580_v17  ;;  %v706_v22 = vsel %vm703_vm5, %v705_v19, %v701_v18 }
 0x3b9   : > { %v919_v53 = vpop.permute.xlu0 %918  ;;  %v708_v45 = vmul.f32 %v1130_v1, %v706_v22 }
 0x3ba   : > { %v486_v55 = vpop.f32.mrf.mxu3  ;;  %v920_v56 = vunpack.i.l.bf16 %v919_v53  ;;  %v921_v57 = vunpack.i.h.bf16 %v919_v53 }
 0x3bb   : > { %746 = vrot.lane.b32.xlu2 %v486_v55, %s975_s12 }
 0x3bc   : > { %609 = vmatpush.msrb.mxu3 %v920_v56 }
 0x3bd   : > { %v924_v0 = vpop.permute.xlu1 %923 }
 0x3be   : > { %610 = vmatpush.msrb.mxu3 %v921_v57  ;;  %v925_v5 = vunpack.i.l.bf16 %v924_v0  ;;  %v926_v15 = vunpack.i.h.bf16 %v924_v0 }
 0x3bf   : > { %881 = vmatmul.msk.f32.vlgmr.msrb.gmra.mxu3 %vm286_vm1, %v581_v3 }
 0x3c0   : > { %735 = vmatpush.msrb.mxu2 %v925_v5 }
 0x3c2   : > { %736 = vmatpush.msrb.mxu2 %v926_v15 }
 0x3c3   : > { %887 = vmatmul.msk.f32.vlgmr.msrb.gmra.mxu2 %vm286_vm1, %v707_v51 }
 0x3c4   : > { %v489_v20 = vpop.f32.mrf.mxu3 }
 0x3c5   : > { %748 = vrot.lane.b32.xlu2 %v489_v20, %s975_s12 }
 0x3c7   : > { %882 = vmatmul.msk.f32.gmra.mxu3 %vm286_vm1, %v582_v21 }
 0x3cb   : > { %888 = vmatmul.msk.f32.gmra.mxu2 %vm286_vm1, %v708_v45 }
 0x415   : > { %v747_v2 = vpop.permute.xlu2 %746 }
 0x416   : > { %v768_v1 = vsel %vm250_vm0, %v1096_v10, %v747_v2 }
 0x41f   : > { %v749_v28 = vpop.permute.xlu2 %748 }
 0x420   : > { %v769_v35 = vsel %vm250_vm0, %v1098_v11, %v749_v28 }
 0x442   : > { %v612_v23 = vpop.f32.mrf.mxu3 }
 0x443   : > { %754 = vrot.lane.b32.xlu0 %v612_v23, %s976_s13 }
 0x446   : > { %v738_v24 = vpop.f32.mrf.mxu2 }
 0x44a   : > { %v615_v25 = vpop.f32.mrf.mxu3 }
 0x44b   : > { %756 = vrot.lane.b32.xlu2 %v615_v25, %s976_s13  ;;  %762 = vrot.lane.b32.xlu0 %v738_v24, %s977_s14 }
 0x44e   : > { %v741_v26 = vpop.f32.mrf.mxu2 }
 0x44f   : > { %764 = vrot.lane.b32.xlu1 %v741_v26, %s977_s14 }
 0x4a5   : > { %v757_v31 = vpop.permute.xlu2 %756 }
 0x4a6   : > { %v771_v36 = vsel %vm286_vm1, %v769_v35, %v757_v31 }
 0x4b5   : > { %v755_v27 = vpop.permute.xlu0 %754 }
 0x4b6   : > { %v770_v29 = vsel %vm286_vm1, %v768_v1, %v755_v27 }
 0x4bd   : > { %v763_v30 = vpop.permute.xlu0 %762 }
 0x4be   : > { %v773_v34 = vsel %vm772_vm6, %v770_v29, %v763_v30 }
 0x4bf   : > { %776 = vst.msk [vmem:[%s231_s19] sm:$0xff] %vm775_vm7, %v773_v34 }
 0x4c1   : > { %v765_v6 = vpop.permute.xlu1 %764 }
 0x4c2   : > { %v774_v37 = vsel %vm772_vm6, %v771_v36, %v765_v6 }
 0x4c3   : > { %777 = vst.msk [vmem:[%s231_s19 + $0x8] sm:$0xff] %vm775_vm7, %v774_v37 }
 0x4c4 PF: > { %s14_s15 = sadd.s32 1, %s966_s15  }
 0x4c5   : > { %p11_p4 = scmp.ge.s32.totalorder %s14_s15, 4  }
 0x4c7   :  { %13 = sbr.rel (!%p11_p4) target bundleno = 1 (0x1), region = 72 }

// kernel: _lambda_.21
= control target key start
LH: loop header
LB: loop body
LE: loop exit
PB: predicated region body
PF: predicated region fallthrough
CT: control target
= control target key end

     0   :  { %vm18_vm0 = vcmask 261120   ;;  %v151_v8 = vmov 32.0   ;;  %s229_s0 = inlined_call_operand.vmem [shape: f32[32,32], index: 0, kind: input, shape index: {}]   ;;  %s230_s1 = inlined_call_operand.vmem [shape: f32[1,32], index: 1, kind: input, shape index: {}]   ;;  %s231_s2 = inlined_call_operand.vmem [shape: f32[1,32], index: 2, kind: input, shape index: {}]   ;;  %s232_s3 = inlined_call_operand.vmem [shape: f32[32,32], index: 3, kind: output, shape index: {}]  }
   0x1   :  { %v16_v0 = vld [vmem:[%s229_s0 + $0x10] sm:$0xff]  ;;  %v14_v1 = vld [vmem:[%s229_s0] sm:$0xff]  ;;  %v17_v4 = vld [vmem:[%s229_s0 + $0x18] sm:$0xff]  ;;  %141 = vrcp.f32 %v151_v8 }
   0x2   :  { %v25_v2 = vsel %vm18_vm0, %v16_v0, 0.0  ;;  %v19_v3 = vsel %vm18_vm0, %v14_v1, 0.0  ;;  %v15_v5 = vld [vmem:[%s229_s0 + $0x8] sm:$0xff]  ;;  %v28_v6 = vsel %vm18_vm0, %v17_v4, 0.0  ;;  %v139_v61 = vld [vmem:[%s230_s1] ss:$0 sm:$0xff] }
   0x3   :  { %26 = vadd.xlane.f32.xlu1 %v25_v2  ;;  %20 = vadd.xlane.f32.xlu0 %v19_v3  ;;  %v22_v7 = vsel %vm18_vm0, %v15_v5, 0.0  ;;  %v140_v2 = vld [vmem:[%s231_s2] ss:$0 sm:$0xff] }
   0x7   :  { %v142_v9 = vpop.eup %141 }
   0x8   :  { %v32_v10 = vmul.f32 32.0, %v142_v9  ;;  %vm36_vm1 = vweird.f32 %v142_v9 }
   0xa   :  { %v33_v11 = vsub.f32 1.0, %v32_v10 }
   0xb   :  { %29 = vadd.xlane.f32.xlu1 %v28_v6  ;;  %23 = vadd.xlane.f32.xlu0 %v22_v7 }
   0xc   :  { %v34_v12 = vmul.f32 %v142_v9, %v33_v11 }
   0xe   :  { %v35_v13 = vadd.f32 %v142_v9, %v34_v12 }
  0x10   :  { %v37_v14 = vsel %vm36_vm1, %v142_v9, %v35_v13 }
  0x76   :  { %v27_v15 = vpop.xlane.xlu1 %26  ;;  %v21_v16 = vpop.xlane.xlu0 %20 }
  0x77   :  { %v40_v17 = vmul.f32 %v37_v14, %v27_v15  ;;  %v38_v18 = vmul.f32 %v37_v14, %v21_v16 }
  0x79   :  { %v188_v19 = vsub.f32 %v16_v0, %v40_v17  ;;  %v42_v20 = vsub.f32 %v14_v1, %v38_v18 }
  0x7b   :  { %v48_v21 = vmul.f32 %v188_v19, %v188_v19  ;;  %v46_v22 = vmul.f32 %v42_v20, %v42_v20 }
  0x7d   :  { %v56_v23 = vsel %vm18_vm0, %v48_v21, 0.0  ;;  %v50_v24 = vsel %vm18_vm0, %v46_v22, 0.0 }
  0x7e   :  { %v30_v25 = vpop.xlane.xlu1 %29  ;;  %57 = vadd.xlane.f32.xlu0 %v56_v23  ;;  %51 = vadd.xlane.f32.xlu2 %v50_v24  ;;  %v24_v26 = vpop.xlane.xlu0 %23 }
  0x7f   :  { %v41_v27 = vmul.f32 %v37_v14, %v30_v25  ;;  %v39_v28 = vmul.f32 %v37_v14, %v24_v26 }
  0x81   :  { %v194_v29 = vsub.f32 %v17_v4, %v41_v27  ;;  %v196_v30 = vsub.f32 %v15_v5, %v39_v28 }
  0x83   :  { %v49_v31 = vmul.f32 %v194_v29, %v194_v29  ;;  %v47_v32 = vmul.f32 %v196_v30, %v196_v30 }
  0x85   :  { %v59_v33 = vsel %vm18_vm0, %v49_v31, 0.0  ;;  %v53_v34 = vsel %vm18_vm0, %v47_v32, 0.0 }
  0x86   :  { %60 = vadd.xlane.f32.xlu1 %v59_v33  ;;  %54 = vadd.xlane.f32.xlu2 %v53_v34 }
  0xf1   :  { %v52_v35 = vpop.xlane.xlu2 %51  ;;  %v58_v36 = vpop.xlane.xlu0 %57 }
  0xf2   :  { %v62_v37 = vmul.f32 %v52_v35, %v37_v14  ;;  %v64_v38 = vmul.f32 %v58_v36, %v37_v14 }
  0xf4   :  { %v66_v39 = vadd.f32 1e-05, %v62_v37  ;;  %v68_v40 = vadd.f32 1e-05, %v64_v38 }
  0xf6   :  { %143 = vrsqrt.f32 %v66_v39  ;;  %vm76_vm4 = vweird.f32 %v66_v39  ;;  %vm96_vm6 = vweird.f32 %v68_v40 }
  0xf7   :  { %145 = vrsqrt.f32 %v68_v40 }
  0xf9   :  { %v61_v41 = vpop.xlane.xlu1 %60  ;;  %v55_v42 = vpop.xlane.xlu2 %54 }
  0xfa   :  { %v65_v43 = vmul.f32 %v61_v41, %v37_v14  ;;  %v63_v44 = vmul.f32 %v55_v42, %v37_v14 }
  0xfc   :  { %v144_v45 = vpop.eup %143  ;;  %v69_v46 = vadd.f32 1e-05, %v65_v43  ;;  %v67_v47 = vadd.f32 1e-05, %v63_v44 }
  0xfd   :  { %v146_v48 = vpop.eup %145  ;;  %v71_v49 = vmul.f32 %v144_v45, %v66_v39  ;;  %vm77_vm2 = vweird.f32 %v144_v45 }
  0xfe   :  { %v91_v50 = vmul.f32 %v146_v48, %v68_v40  ;;  %147 = vrsqrt.f32 %v69_v46  ;;  %vm97_vm3 = vweird.f32 %v146_v48  ;;  %vm78_vm5 = vmor %vm76_vm4, %vm77_vm2  ;;  %vm106_vm10 = vweird.f32 %v69_v46 }
  0xff   :  { %v72_v51 = vmul.f32 %v144_v45, %v71_v49  ;;  %149 = vrsqrt.f32 %v67_v47  ;;  %vm98_vm7 = vmor %vm96_vm6, %vm97_vm3  ;;  %vm86_vm12 = vweird.f32 %v67_v47 }
 0x100   :  { %v92_v52 = vmul.f32 %v146_v48, %v91_v50 }
 0x101   :  { %v73_v53 = vmul.f32 0.5, %v72_v51 }
 0x102   :  { %v93_v54 = vmul.f32 0.5, %v92_v52 }
 0x103   :  { %v74_v55 = vsub.f32 1.5, %v73_v53 }
 0x104   :  { %v148_v56 = vpop.eup %147  ;;  %v94_v57 = vsub.f32 1.5, %v93_v54 }
 0x105   :  { %v150_v58 = vpop.eup %149  ;;  %v75_v59 = vmul.f32 %v144_v45, %v74_v55  ;;  %v101_v60 = vmul.f32 %v148_v56, %v69_v46  ;;  %vm107_vm8 = vweird.f32 %v148_v56 }
 0x106   :  { %v95_v62 = vmul.f32 %v146_v48, %v94_v57  ;;  %v81_v63 = vmul.f32 %v150_v58, %v67_v47  ;;  %vm87_vm9 = vweird.f32 %v150_v58  ;;  %vm108_vm11 = vmor %vm106_vm10, %vm107_vm8 }
 0x107   :  { %v79_v0 = vsel %vm78_vm5, %v144_v45, %v75_v59  ;;  %v102_v1 = vmul.f32 %v148_v56, %v101_v60  ;;  %vm88_vm13 = vmor %vm86_vm12, %vm87_vm9 }
 0x108   :  { %v110_v3 = vmul.f32 %v79_v0, %v42_v20  ;;  %v99_v4 = vsel %vm98_vm7, %v146_v48, %v95_v62  ;;  %v82_v5 = vmul.f32 %v150_v58, %v81_v63 }
 0x109   :  { %v112_v6 = vmul.f32 %v99_v4, %v188_v19  ;;  %v103_v7 = vmul.f32 0.5, %v102_v1 }
 0x10a   :  { %v118_v8 = vmul.f32 %v139_v61, %v110_v3  ;;  %v83_v9 = vmul.f32 0.5, %v82_v5 }
 0x10b   :  { %v120_v10 = vmul.f32 %v139_v61, %v112_v6  ;;  %v104_v11 = vsub.f32 1.5, %v103_v7 }
 0x10c   :  { %v126_v12 = vadd.f32 %v140_v2, %v118_v8  ;;  %v84_v13 = vsub.f32 1.5, %v83_v9 }
 0x10d   :  { %v128_v14 = vadd.f32 %v140_v2, %v120_v10  ;;  %v105_v15 = vmul.f32 %v148_v56, %v104_v11 }
 0x10e   :  { %130 = vst.msk [vmem:[%s232_s3] sm:$0xff] %vm18_vm0, %v126_v12  ;;  %v85_v16 = vmul.f32 %v150_v58, %v84_v13 }
 0x10f   :  { %132 = vst.msk [vmem:[%s232_s3 + $0x10] sm:$0xff] %vm18_vm0, %v128_v14  ;;  %v109_v17 = vsel %vm108_vm11, %v148_v56, %v105_v15 }
 0x110   :  { %v113_v18 = vmul.f32 %v109_v17, %v194_v29  ;;  %v89_v19 = vsel %vm88_vm13, %v150_v58, %v85_v16 }
 0x111   :  { %v111_v20 = vmul.f32 %v89_v19, %v196_v30 }
 0x112   :  { %v121_v21 = vmul.f32 %v139_v61, %v113_v18 }
 0x113   :  { %v119_v22 = vmul.f32 %v139_v61, %v111_v20 }
 0x114   :  { %v129_v23 = vadd.f32 %v140_v2, %v121_v21 }
 0x115   :  { %v127_v24 = vadd.f32 %v140_v2, %v119_v22 }
 0x116   :  { %133 = vst.msk [vmem:[%s232_s3 + $0x18] sm:$0xff] %vm18_vm0, %v129_v23 }
 0x117   :  { %131 = vst.msk [vmem:[%s232_s3 + $0x8] sm:$0xff] %vm18_vm0, %v127_v24 }

// kernel: _lambda_.15
= control target key start
LH: loop header
LB: loop body
LE: loop exit
PB: predicated region body
PF: predicated region fallthrough
CT: control target
= control target key end

     0   :  { %vm41_vm0 = vcmask 261120   ;;  %vm99_vm1 = vcmask 523264   ;;  %v303_v50 = vmov 32.0   ;;  %s469_s1 = inlined_call_operand.vmem [shape: f32[32,64], index: 1, kind: input, shape index: {}]   ;;  %s470_s3 = inlined_call_operand.vmem [shape: f32[64,32], index: 3, kind: input, shape index: {}]   ;;  %s471_s0 = inlined_call_operand.vmem [shape: f32[32,32], index: 0, kind: input, shape index: {}, may-alias: {0,5}]   ;;  %s472_s2 = inlined_call_operand.vmem [shape: f32[1,64], index: 2, kind: input, shape index: {}]   ;;  %s473_s4 = inlined_call_operand.vmem [shape: f32[1,32], index: 4, kind: input, shape index: {}]   ;;  %s474_s5 = inlined_call_operand.vmem [shape: f32[32,32], index: 5, kind: input, shape index: {}, may-alias: {0,5}]   ;;  %s475_s6 = inlined_call_operand.vmem [shape: f32[1,32], index: 6, kind: input, shape index: {}]   ;;  %s476_s7 = inlined_call_operand.vmem [shape: f32[1,32], index: 7, kind: input, shape index: {}]   ;;  %s477_s8 = inlined_call_operand.vmem [shape: f32[32,32], index: 8, kind: output, shape index: {}]  }
   0x1   :  { %v36_v0 = vld [vmem:[%s469_s1 + $0x18] sm:$0xff]  ;;  %v35_v1 = vld [vmem:[%s469_s1 + $0x10] sm:$0xff]  ;;  %v34_v2 = vld [vmem:[%s469_s1 + $0x8] sm:$0xff]  ;;  %293 = vrcp.f32 %v303_v50 }
   0x2   :  { %66 = vmatpush.msra.mxu0 %v36_v0  ;;  %276 = vmatpush.msra.mxu3 %v36_v0  ;;  %v94_v3 = vld [vmem:[%s470_s3 + $0x38] sm:$0xff]  ;;  %v93_v4 = vld [vmem:[%s470_s3 + $0x30] sm:$0xff]  ;;  %v33_v5 = vld [vmem:[%s469_s1] sm:$0xff] }
   0x3   :  { %120 = vmatpush.msra.mxu1 %v94_v3  ;;  %280 = vmatpush.msra.mxu2 %v94_v3  ;;  %v29_v6 = vld [vmem:[%s471_s0] sm:$0xff]  ;;  %v30_v7 = vld [vmem:[%s471_s0 + $0x8] sm:$0xff]  ;;  %v90_v10 = vld [vmem:[%s470_s3 + $0x18] sm:$0xff] }
   0x4   :  { %67 = vmatpush.msra.mxu0 %v35_v1  ;;  %277 = vmatpush.msra.mxu3 %v35_v1  ;;  %v92_v8 = vld [vmem:[%s470_s3 + $0x28] sm:$0xff]  ;;  %v91_v9 = vld [vmem:[%s470_s3 + $0x20] sm:$0xff]  ;;  %v31_v11 = vld [vmem:[%s471_s0 + $0x10] sm:$0xff] }
   0x5   :  { %121 = vmatpush.msra.mxu1 %v93_v4  ;;  %281 = vmatpush.msra.mxu2 %v93_v4  ;;  %v32_v12 = vld [vmem:[%s471_s0 + $0x18] sm:$0xff]  ;;  %v89_v13 = vld [vmem:[%s470_s3 + $0x10] sm:$0xff]  ;;  %v88_v14 = vld [vmem:[%s470_s3 + $0x8] sm:$0xff] }
   0x6   :  { %68 = vmatpush.msra.mxu0 %v34_v2  ;;  %278 = vmatpush.msra.mxu3 %v34_v2  ;;  %v87_v15 = vld [vmem:[%s470_s3] sm:$0xff]  ;;  %v142_v36 = vld [vmem:[%s474_s5 + $0x8] sm:$0xff]  ;;  %v143_v41 = vld [vmem:[%s474_s5 + $0x10] sm:$0xff] }
   0x7   :  { %122 = vmatpush.msra.mxu1 %v92_v8  ;;  %282 = vmatpush.msra.mxu2 %v92_v8  ;;  %v289_v16 = vld [vmem:[%s472_s2] ss:$0 sm:$0xff]  ;;  %v144_v46 = vld [vmem:[%s474_s5 + $0x18] sm:$0xff]  ;;  %v294_v51 = vpop.eup %293 }
   0x8   :  { %69 = vmatpush.msra.mxu0 %v33_v5  ;;  %279 = vmatpush.msra.mxu3 %v33_v5  ;;  %v290_v29 = vld [vmem:[%s473_s4] ss:$0 sm:$0xff]  ;;  %v162_v52 = vmul.f32 32.0, %v294_v51  ;;  %vm166_vm2 = vweird.f32 %v294_v51 }
   0x9   :  { %268 = vmatmul.msk.f32.vlgmr.msra.gmra.mxu0 %vm41_vm0, %v29_v6  ;;  %269 = vmatmul.msk.f32.vlgmr.msra.gmra.mxu3 %vm41_vm0, %v30_v7  ;;  %v141_v31 = vld [vmem:[%s474_s5] sm:$0xff] }
   0xa   :  { %123 = vmatpush.msra.mxu1 %v91_v9  ;;  %283 = vmatpush.msra.mxu2 %v91_v9  ;;  %v163_v53 = vsub.f32 1.0, %v162_v52 }
   0xc   :  { %124 = vmatpush.msra.mxu1 %v90_v10  ;;  %284 = vmatpush.msra.mxu2 %v90_v10  ;;  %v164_v54 = vmul.f32 %v294_v51, %v163_v53 }
   0xe   :  { %125 = vmatpush.msra.mxu1 %v89_v13  ;;  %285 = vmatpush.msra.mxu2 %v89_v13  ;;  %v165_v55 = vadd.f32 %v294_v51, %v164_v54 }
  0x10   :  { %126 = vmatpush.msra.mxu1 %v88_v14  ;;  %286 = vmatpush.msra.mxu2 %v88_v14  ;;  %v423_v56 = vsel %vm166_vm2, %v294_v51, %v165_v55 }
  0x11   :  { %270 = vmatmul.msk.f32.gmra.mxu3 %vm41_vm0, %v31_v11 }
  0x12   :  { %127 = vmatpush.msra.mxu1 %v87_v15  ;;  %287 = vmatpush.msra.mxu2 %v87_v15 }
  0x19   :  { %271 = vmatmul.msk.f32.gmra.mxu3 %vm41_vm0, %v32_v12 }
  0x86   :  { %v71_v17 = vpop.f32.mrf.mxu0 }
  0x87   :  { %v72_v18 = vadd.f32 %v289_v16, %v71_v17 }
  0x89   :  { %v83_v19 = vmax.f32 %v72_v18, 0.0 }
  0x8b   :  { %272 = vmatmul.msk.f32.vlgmr.msra.gmra.mxu1 %vm99_vm1, %v83_v19 }
  0x8c   :  { %v74_v20 = vpop.f32.mrf.mxu3 }
  0x8d   :  { %v75_v21 = vadd.f32 %v289_v16, %v74_v20 }
  0x8f   :  { %v84_v22 = vmax.f32 %v75_v21, 0.0 }
  0x93   :  { %273 = vmatmul.msk.f32.gmra.mxu1 %vm99_vm1, %v84_v22 }
  0x94   :  { %v77_v23 = vpop.f32.mrf.mxu3 }
  0x95   :  { %v78_v24 = vadd.f32 %v289_v16, %v77_v23 }
  0x97   :  { %v85_v25 = vmax.f32 %v78_v24, 0.0 }
  0x99   :  { %274 = vmatmul.msk.f32.vlgmr.msra.gmra.mxu2 %vm99_vm1, %v85_v25 }
  0x9c   :  { %v80_v26 = vpop.f32.mrf.mxu3 }
  0x9d   :  { %v81_v27 = vadd.f32 %v289_v16, %v80_v26 }
  0x9f   :  { %v86_v28 = vmax.f32 %v81_v27, 0.0 }
  0xa1   :  { %275 = vmatmul.msk.f32.gmra.mxu2 %vm99_vm1, %v86_v28  ;;  %v291_v28 = vld [vmem:[%s475_s6] ss:$0 sm:$0xff] }
 0x108   :  { %v129_v30 = vpop.f32.mrf.mxu1 }
 0x109   :  { %v130_v32 = vadd.f32 %v290_v29, %v129_v30 }
 0x10b   :  { %v145_v33 = vadd.f32 %v141_v31, %v130_v32  ;;  %v292_v32 = vld [vmem:[%s476_s7] ss:$0 sm:$0xff] }
 0x10d   :  { %v149_v34 = vsel %vm41_vm0, %v145_v33, 0.0 }
 0x10e   :  { %150 = vadd.xlane.f32.xlu0 %v149_v34 }
 0x110   :  { %v132_v35 = vpop.f32.mrf.mxu1 }
 0x111   :  { %v133_v37 = vadd.f32 %v290_v29, %v132_v35 }
 0x113   :  { %v146_v38 = vadd.f32 %v142_v36, %v133_v37 }
 0x115   :  { %v152_v39 = vsel %vm41_vm0, %v146_v38, 0.0 }
 0x116   :  { %153 = vadd.xlane.f32.xlu0 %v152_v39 }
 0x11c   :  { %v135_v40 = vpop.f32.mrf.mxu2 }
 0x11d   :  { %v136_v42 = vadd.f32 %v290_v29, %v135_v40 }
 0x11f   :  { %v147_v43 = vadd.f32 %v143_v41, %v136_v42 }
 0x121   :  { %v155_v44 = vsel %vm41_vm0, %v147_v43, 0.0 }
 0x122   :  { %156 = vadd.xlane.f32.xlu1 %v155_v44 }
 0x124   :  { %v138_v45 = vpop.f32.mrf.mxu2 }
 0x125   :  { %v139_v47 = vadd.f32 %v290_v29, %v138_v45 }
 0x127   :  { %v148_v48 = vadd.f32 %v144_v46, %v139_v47 }
 0x129   :  { %v158_v49 = vsel %vm41_vm0, %v148_v48, 0.0 }
 0x12a   :  { %159 = vadd.xlane.f32.xlu1 %v158_v49 }
 0x181   :  { %v151_v57 = vpop.xlane.xlu0 %150 }
 0x182   :  { %v168_v58 = vmul.f32 %v423_v56, %v151_v57 }
 0x184   :  { %v172_v59 = vsub.f32 %v145_v33, %v168_v58 }
 0x186   :  { %v176_v60 = vmul.f32 %v172_v59, %v172_v59 }
 0x188   :  { %v180_v61 = vsel %vm41_vm0, %v176_v60, 0.0 }
 0x189   :  { %181 = vadd.xlane.f32.xlu2 %v180_v61  ;;  %v154_v62 = vpop.xlane.xlu0 %153 }
 0x18a   :  { %v169_v63 = vmul.f32 %v423_v56, %v154_v62 }
 0x18c   :  { %v173_v0 = vsub.f32 %v146_v38, %v169_v63 }
 0x18e   :  { %v177_v1 = vmul.f32 %v173_v0, %v173_v0 }
 0x190   :  { %v183_v2 = vsel %vm41_vm0, %v177_v1, 0.0 }
 0x191   :  { %184 = vadd.xlane.f32.xlu2 %v183_v2 }
 0x195   :  { %v157_v3 = vpop.xlane.xlu1 %156 }
 0x196   :  { %v170_v4 = vmul.f32 %v423_v56, %v157_v3 }
 0x198   :  { %v430_v5 = vsub.f32 %v147_v43, %v170_v4 }
 0x19a   :  { %v178_v6 = vmul.f32 %v430_v5, %v430_v5 }
 0x19c   :  { %v186_v7 = vsel %vm41_vm0, %v178_v6, 0.0 }
 0x19d   :  { %v160_v8 = vpop.xlane.xlu1 %159  ;;  %187 = vadd.xlane.f32.xlu0 %v186_v7 }
 0x19e   :  { %v171_v9 = vmul.f32 %v423_v56, %v160_v8 }
 0x1a0   :  { %v436_v10 = vsub.f32 %v148_v48, %v171_v9 }
 0x1a2   :  { %v179_v11 = vmul.f32 %v436_v10, %v436_v10 }
 0x1a4   :  { %v189_v12 = vsel %vm41_vm0, %v179_v11, 0.0 }
 0x1a5   :  { %190 = vadd.xlane.f32.xlu1 %v189_v12 }
 0x1fc   :  { %v182_v13 = vpop.xlane.xlu2 %181 }
 0x1fd   :  { %v192_v14 = vmul.f32 %v182_v13, %v423_v56 }
 0x1ff   :  { %v196_v15 = vadd.f32 1e-05, %v192_v14 }
 0x201   :  { %295 = vrsqrt.f32 %v196_v15  ;;  %vm206_vm4 = vweird.f32 %v196_v15 }
 0x204   :  { %v185_v16 = vpop.xlane.xlu2 %184 }
 0x205   :  { %v193_v17 = vmul.f32 %v185_v16, %v423_v56 }
 0x207   :  { %v296_v18 = vpop.eup %295  ;;  %v197_v19 = vadd.f32 1e-05, %v193_v17 }
 0x208   :  { %v201_v20 = vmul.f32 %v296_v18, %v196_v15  ;;  %vm207_vm3 = vweird.f32 %v296_v18 }
 0x209   :  { %297 = vrsqrt.f32 %v197_v19  ;;  %vm208_vm5 = vmor %vm206_vm4, %vm207_vm3  ;;  %vm216_vm7 = vweird.f32 %v197_v19 }
 0x20a   :  { %v202_v21 = vmul.f32 %v296_v18, %v201_v20 }
 0x20c   :  { %v203_v22 = vmul.f32 0.5, %v202_v21 }
 0x20e   :  { %v204_v23 = vsub.f32 1.5, %v203_v22 }
 0x20f   :  { %v298_v24 = vpop.eup %297 }
 0x210   :  { %v205_v25 = vmul.f32 %v296_v18, %v204_v23  ;;  %v211_v26 = vmul.f32 %v298_v24, %v197_v19  ;;  %v188_v27 = vpop.xlane.xlu0 %187  ;;  %vm217_vm6 = vweird.f32 %v298_v24 }
 0x211   :  { %v194_v29 = vmul.f32 %v188_v27, %v423_v56  ;;  %vm218_vm8 = vmor %vm216_vm7, %vm217_vm6 }
 0x212   :  { %v209_v30 = vsel %vm208_vm5, %v296_v18, %v205_v25  ;;  %v212_v31 = vmul.f32 %v298_v24, %v211_v26 }
 0x213   :  { %v240_v33 = vmul.f32 %v209_v30, %v172_v59  ;;  %v198_v34 = vadd.f32 1e-05, %v194_v29 }
 0x214   :  { %v213_v35 = vmul.f32 0.5, %v212_v31 }
 0x215   :  { %v248_v36 = vmul.f32 %v291_v28, %v240_v33  ;;  %299 = vrsqrt.f32 %v198_v34  ;;  %vm226_vm10 = vweird.f32 %v198_v34 }
 0x216   :  { %v214_v37 = vsub.f32 1.5, %v213_v35 }
 0x217   :  { %v256_v38 = vadd.f32 %v292_v32, %v248_v36 }
 0x218   :  { %v215_v39 = vmul.f32 %v298_v24, %v214_v37  ;;  %v191_v40 = vpop.xlane.xlu1 %190 }
 0x219   :  { %260 = vst.msk [vmem:[%s477_s8] sm:$0xff] %vm41_vm0, %v256_v38  ;;  %v195_v41 = vmul.f32 %v191_v40, %v423_v56 }
 0x21a   :  { %v219_v42 = vsel %vm218_vm8, %v298_v24, %v215_v39 }
 0x21b   :  { %v300_v43 = vpop.eup %299  ;;  %v241_v44 = vmul.f32 %v219_v42, %v173_v0  ;;  %v199_v45 = vadd.f32 1e-05, %v195_v41 }
 0x21c   :  { %v221_v46 = vmul.f32 %v300_v43, %v198_v34  ;;  %vm227_vm9 = vweird.f32 %v300_v43 }
 0x21d   :  { %v249_v47 = vmul.f32 %v291_v28, %v241_v44  ;;  %301 = vrsqrt.f32 %v199_v45  ;;  %vm228_vm11 = vmor %vm226_vm10, %vm227_vm9  ;;  %vm236_vm13 = vweird.f32 %v199_v45 }
 0x21e   :  { %v222_v48 = vmul.f32 %v300_v43, %v221_v46 }
 0x21f   :  { %v257_v49 = vadd.f32 %v292_v32, %v249_v47 }
 0x220   :  { %v223_v50 = vmul.f32 0.5, %v222_v48 }
 0x221   :  { %261 = vst.msk [vmem:[%s477_s8 + $0x8] sm:$0xff] %vm41_vm0, %v257_v49 }
 0x222   :  { %v224_v51 = vsub.f32 1.5, %v223_v50 }
 0x223   :  { %v302_v52 = vpop.eup %301 }
 0x224   :  { %v225_v53 = vmul.f32 %v300_v43, %v224_v51  ;;  %v231_v54 = vmul.f32 %v302_v52, %v199_v45  ;;  %vm237_vm12 = vweird.f32 %v302_v52 }
 0x225   :  { %vm238_vm14 = vmor %vm236_vm13, %vm237_vm12 }
 0x226   :  { %v229_v55 = vsel %vm228_vm11, %v300_v43, %v225_v53  ;;  %v232_v56 = vmul.f32 %v302_v52, %v231_v54 }
 0x227   :  { %v242_v57 = vmul.f32 %v229_v55, %v430_v5 }
 0x228   :  { %v233_v58 = vmul.f32 0.5, %v232_v56 }
 0x229   :  { %v250_v59 = vmul.f32 %v291_v28, %v242_v57 }
 0x22a   :  { %v234_v60 = vsub.f32 1.5, %v233_v58 }
 0x22b   :  { %v258_v61 = vadd.f32 %v292_v32, %v250_v59 }
 0x22c   :  { %v235_v62 = vmul.f32 %v302_v52, %v234_v60 }
 0x22d   :  { %262 = vst.msk [vmem:[%s477_s8 + $0x10] sm:$0xff] %vm41_vm0, %v258_v61 }
 0x22e   :  { %v239_v63 = vsel %vm238_vm14, %v302_v52, %v235_v62 }
 0x22f   :  { %v243_v0 = vmul.f32 %v239_v63, %v436_v10 }
 0x231   :  { %v251_v1 = vmul.f32 %v291_v28, %v243_v0 }
 0x233   :  { %v259_v2 = vadd.f32 %v292_v32, %v251_v1 }
 0x235   :  { %263 = vst.msk [vmem:[%s477_s8 + $0x18] sm:$0xff] %vm41_vm0, %v259_v2 }

</bundles_post_ra>
